<compile_context>
chip_gen: v7x
topology: tpu7x:2x2x1
jax: 0.10.0
libtpu: 0.0.40
codegen_flags: <defaults>
</compile_context>

<pallas_src>
import numpy as np

import jax
import jax.numpy as jnp
from jax.experimental import pallas as pl
from jax.experimental.pallas import tpu as pltpu  # noqa: F401  (TPU backend)

LEAKY_SLOPE = 0.1
BN_EPS = 1e-5


# ----------------------------------------------------------------------------
# The single fused Pallas kernel
# ----------------------------------------------------------------------------
def _fused_forward_kernel(a2_ref, w1_ref, w2_ref, scale2_ref, shift2_ref,
                          pool_ref, avg_ref,
                          fc1w_ref, fc1b_ref, fc2w_ref, fc2b_ref,
                          o_ref):
    """Whole simple_2CNN forward on VMEM-resident data.

    a2     : (9*B*m2, K1p)   conv1-im2col rows gathered per conv2 tap
                             (zero rows where the tap hits conv2 padding);
                             column 27 is the in-bounds mask, K padded to 32.
    w1     : (K1p, C1)       conv1 weight rows (kh,kw,cin) + bias row at 27, zero-padded.
    w2     : (9, C1, C2)     conv2 weight per tap (k = kh*3 + kw)
    scale2 : (1, C2)         folded BatchNorm scale (inference)
    shift2 : (1, C2)         folded conv2-bias + BatchNorm shift
    pool   : (4*B*mp, B*m2)  stacked 0/1 gather, one row-block per 2x2 pool corner
    avg    : (B, B*mp)       per-batch averaging matrix (AdaptiveAvgPool2d((1,1)))
    fc1/fc2: ClassBlock weights; fc2 zero-padded to a lane-dense class dim.
    """
    f32 = jnp.float32
    rows2 = a2_ref.shape[0] // 9          # B * H2 * W2  (conv2 output rows)
    mp = pool_ref.shape[0] // 4           # B * Hp * Wp  (max-pool output rows)

    # ---- conv1 + conv2 fused: per-tap GEMM pair, accumulate in f32 ---------
    w1 = w1_ref[...]
    t0 = jnp.dot(a2_ref[0:rows2, :], w1, preferred_element_type=f32)
    acc = jnp.dot(t0, w2_ref[0], preferred_element_type=f32)
    for k in range(1, 9):
        tk = jnp.dot(a2_ref[k * rows2:(k + 1) * rows2, :], w1,
                     preferred_element_type=f32)
        acc = acc + jnp.dot(tk, w2_ref[k], preferred_element_type=f32)

    # ---- BatchNorm (folded, inference) + LeakyReLU(0.1) ---------------------
    y2 = acc * scale2_ref[...] + shift2_ref[...]
    y2 = jnp.where(y2 > 0, y2, LEAKY_SLOPE * y2)

    # ---- MaxPool2d(2,2): one stacked gather-GEMM, max over 4 corner blocks -
    p = jnp.dot(pool_ref[...], y2, preferred_element_type=f32)     # (4*mp, C2)
    pooled = jnp.maximum(jnp.maximum(p[0:mp, :], p[mp:2 * mp, :]),
                         jnp.maximum(p[2 * mp:3 * mp, :], p[3 * mp:4 * mp, :]))

    # ---- AdaptiveAvgPool2d((1,1)) -------------------------------------------
    feat = jnp.dot(avg_ref[...], pooled, preferred_element_type=f32)  # (B, C2)

    # ---- ClassBlock: Linear -> LeakyReLU(0.1) -> Dropout(eval) -> Linear ----
    h = jnp.dot(feat, fc1w_ref[...], preferred_element_type=f32) + fc1b_ref[...]
    h = jnp.where(h > 0, h, LEAKY_SLOPE * h)
    # TODO(synk): Dropout(p=0.5) is identity in eval mode; training-mode RNG mask not implemented.
    y = jnp.dot(h, fc2w_ref[...], preferred_element_type=f32) + fc2b_ref[...]
    o_ref[...] = y.astype(o_ref.dtype)


# ----------------------------------------------------------------------------
# Plain-JAX / numpy glue (runs once per trace; everything below feeds ONE kernel)
# ----------------------------------------------------------------------------
def _conv_out(n, k=3, s=2, p=1):
    return (n + 2 * p - k) // s + 1


def _im2col(x, ksize, stride, pad):
    """x: (B,H,W,C) -> (B*Ho*Wo, ksize*ksize*C); rows (b,ho,wo), cols (kh,kw,cin)."""
    x = jnp.pad(x, ((0, 0), (pad, pad), (pad, pad), (0, 0)))
    B, Hp_, Wp_, C = x.shape
    Ho = (Hp_ - ksize) // stride + 1
    Wo = (Wp_ - ksize) // stride + 1
    cols = []
    for kh in range(ksize):
        for kw in range(ksize):
            cols.append(x[:, kh:kh + stride * (Ho - 1) + 1:stride,
                          kw:kw + stride * (Wo - 1) + 1:stride, :])
    cols = jnp.stack(cols, axis=3)                        # (B, Ho, Wo, k*k, C)
    return cols.reshape(B * Ho * Wo, ksize * ksize * C), Ho, Wo


def _build_static_maps(B, H1, W1):
    """Compile-time gather/selector tables (pure numpy, baked as constants)."""
    H2, W2 = _conv_out(H1), _conv_out(W1)
    Hp, Wp = H2 // 2, W2 // 2
    m1, m2, mp = H1 * W1, H2 * W2, Hp * Wp

    # conv2 tap -> conv1-output row index (+ in-bounds mask, 0 => zero padding).
    idx = np.zeros((9 * B * m2,), np.int32)
    mask = np.zeros((9 * B * m2,), np.float32)
    for kh in range(3):
        for kw in range(3):
            k = kh * 3 + kw
            for b in range(B):
                for ho in range(H2):
                    for wo in range(W2):
                        r = k * B * m2 + b * m2 + ho * W2 + wo
                        h, w = 2 * ho - 1 + kh, 2 * wo - 1 + kw
                        if 0 <= h < H1 and 0 <= w < W1:
                            idx[r] = b * m1 + h * W1 + w
                            mask[r] = 1.0

    # 2x2 max-pool corners, stacked along rows (one row-block per corner).
    pool = np.zeros((4 * B * mp, B * m2), np.float32)
    for dh in range(2):
        for dw in range(2):
            c = dh * 2 + dw
            for b in range(B):
                for hp in range(Hp):
                    for wp in range(Wp):
                        pool[c * B * mp + b * mp + hp * Wp + wp,
                             b * m2 + (2 * hp + dh) * W2 + (2 * wp + dw)] = 1.0

    # Global average over the pooled map, per batch element.
    avg = np.zeros((B, B * mp), np.float32)
    for b in range(B):
        avg[b, b * mp:(b + 1) * mp] = 1.0 / mp

    return jnp.asarray(idx), jnp.asarray(mask), jnp.asarray(pool), jnp.asarray(avg)


def init_params(key, num_classes):
    ks = jax.random.split(key, 10)

    def kaiming(k, shape, fan):
        return jax.random.normal(k, shape, jnp.float32) * jnp.sqrt(2.0 / fan)

    p = {}
    # conv weights stored as (kh, kw, cin, cout)  (== torch (cout,cin,kh,kw) transposed)
    p["conv1_w"] = kaiming(ks[0], (3, 3, 3, 128), fan=3 * 3 * 3)
    p["conv1_b"] = 0.1 * jax.random.normal(ks[1], (128,), jnp.float32)
    p["conv2_w"] = kaiming(ks[2], (3, 3, 128, 256), fan=3 * 3 * 128)
    p["conv2_b"] = 0.1 * jax.random.normal(ks[3], (256,), jnp.float32)
    # BatchNorm2d(256), inference mode (non-trivial stats so the folding is exercised).
    p["bn_gamma"] = 1.0 + 0.1 * jax.random.normal(ks[4], (256,), jnp.float32)
    p["bn_beta"] = 0.1 * jax.random.normal(ks[5], (256,), jnp.float32)
    p["bn_mean"] = 0.1 * jax.random.normal(ks[6], (256,), jnp.float32)
    p["bn_var"] = jax.random.uniform(ks[7], (256,), jnp.float32, minval=0.5, maxval=1.5)
    # ClassBlock(256, num_classes): Linear(256,512) kaiming fan_out, Linear(512,C) std=0.001
    p["fc1_w"] = kaiming(ks[8], (256, 512), fan=512)
    p["fc1_b"] = jnp.zeros((512,), jnp.float32)
    p["fc2_w"] = 0.001 * jax.random.normal(ks[9], (512, num_classes), jnp.float32)
    p["fc2_b"] = jnp.zeros((num_classes,), jnp.float32)
    return p


def simple_2cnn_forward(x_nchw, params):
    x = jnp.transpose(x_nchw, (0, 2, 3, 1)).astype(jnp.float32)   # NCHW -> NHWC
    B = x.shape[0]
    c1 = params["conv1_w"].shape[-1]
    c2 = params["conv2_w"].shape[-1]
    nc = params["fc2_w"].shape[-1]

    # conv1 im2col of the network input (tiny; fused by XLA), then gather the
    # rows each conv2 tap needs (zero rows where the tap falls in conv2's zero
    # padding).  The in-bounds mask is appended as an extra column so conv1's
    # bias is applied by the augmented w1 GEMM inside the kernel.
    a1, H1, W1 = _im2col(x, 3, 2, 1)                              # (B*H1*W1, 27)
    idx, mask, pool, avg = _build_static_maps(B, H1, W1)
    a2 = a1[idx] * mask[:, None]                                  # (9*B*m2, 27)
    a2 = jnp.concatenate([a2, mask[:, None]], axis=1)             # + mask column
    k1a = a2.shape[1]
    k1p = ((k1a + 7) // 8) * 8                                    # pad 28 -> 32
    a2 = jnp.pad(a2, ((0, 0), (0, k1p - k1a)))

    w1 = params["conv1_w"].reshape(-1, c1)                        # (27, c1)
    w1 = jnp.concatenate([w1, params["conv1_b"][None, :]], axis=0)  # bias row
    w1 = jnp.pad(w1, ((0, k1p - k1a), (0, 0)))                    # (32, c1)

    # conv2 weights per tap + folded conv-bias / BatchNorm (inference) affine.
    w2 = params["conv2_w"].reshape(9, c1, c2)
    inv = params["bn_gamma"] * jax.lax.rsqrt(params["bn_var"] + BN_EPS)
    scale2 = inv[None, :]
    shift2 = (params["bn_beta"] + (params["conv2_b"] - params["bn_mean"]) * inv)[None, :]

    # ClassBlock weights; pad the class dim up to a lane-dense multiple of 128.
    ncp = max(128, ((nc + 127) // 128) * 128)
    fc1w, fc1b = params["fc1_w"], params["fc1_b"][None, :]
    fc2w = jnp.pad(params["fc2_w"], ((0, 0), (0, ncp - nc)))
    fc2b = jnp.pad(params["fc2_b"], (0, ncp - nc))[None, :]

    out = pl.pallas_call(
        _fused_forward_kernel,
        out_shape=jax.ShapeDtypeStruct((B, ncp), jnp.float32),
    )(a2, w1, w2, scale2, shift2, pool, avg, fc1w, fc1b, fc2w, fc2b)
    return out[:, :nc]


def reference_forward(x_nchw, params):
    """Pure-JAX reference (same eval-mode semantics) for a correctness check."""
    x = jnp.transpose(x_nchw, (0, 2, 3, 1)).astype(jnp.float32)
    dn = ("NHWC", "HWIO", "NHWC")
    y1 = jax.lax.conv_general_dilated(x, params["conv1_w"], (2, 2), ((1, 1), (1, 1)),
                                      dimension_numbers=dn) + params["conv1_b"]
    y2 = jax.lax.conv_general_dilated(y1, params["conv2_w"], (2, 2), ((1, 1), (1, 1)),
                                      dimension_numbers=dn) + params["conv2_b"]
    inv = params["bn_gamma"] * jax.lax.rsqrt(params["bn_var"] + BN_EPS)
    y2 = (y2 - params["bn_mean"]) * inv + params["bn_beta"]
    y2 = jnp.where(y2 > 0, y2, LEAKY_SLOPE * y2)
    B, H, W, C = y2.shape
    y2 = y2.reshape(B, H // 2, 2, W // 2, 2, C).max(axis=(2, 4))   # MaxPool2d(2,2)
    feat = y2.mean(axis=(1, 2))                                    # AdaptiveAvgPool2d((1,1))
    h = feat @ params["fc1_w"] + params["fc1_b"]
    h = jnp.where(h > 0, h, LEAKY_SLOPE * h)
    return h @ params["fc2_w"] + params["fc2_b"]


if __name__ == "__main__":
    num_classes = 10
    key = jax.random.PRNGKey(0)
    k_x, k_p = jax.random.split(key)
    x = jax.random.normal(k_x, (2, 3, 16, 16), jnp.float32)   # NCHW, PyTorch convention
    params = init_params(k_p, num_classes)

    out = jax.block_until_ready(jax.jit(simple_2cnn_forward)(x, params))
    assert out.shape == (2, num_classes), out.shape

    ref = jax.block_until_ready(reference_forward(x, params))
    assert jnp.allclose(out, ref, atol=2e-3, rtol=2e-3), float(jnp.max(jnp.abs(out - ref)))

    print("KERNEL_OK")
</pallas_src>

<mosaic_0001>
module attributes {stable_mosaic.version = 11 : i64} {
  func.func @_fused_forward_kernel(%arg0: memref<288x32xf32, #tpu.memory_space<vmem>>, %arg1: memref<32x128xf32, #tpu.memory_space<vmem>>, %arg2: memref<9x128x256xf32, #tpu.memory_space<vmem>>, %arg3: memref<1x256xf32, #tpu.memory_space<vmem>>, %arg4: memref<1x256xf32, #tpu.memory_space<vmem>>, %arg5: memref<32x32xf32, #tpu.memory_space<vmem>>, %arg6: memref<2x8xf32, #tpu.memory_space<vmem>>, %arg7: memref<256x512xf32, #tpu.memory_space<vmem>>, %arg8: memref<1x512xf32, #tpu.memory_space<vmem>>, %arg9: memref<512x128xf32, #tpu.memory_space<vmem>>, %arg10: memref<1x128xf32, #tpu.memory_space<vmem>>, %arg11: memref<2x128xf32, #tpu.memory_space<vmem>>) attributes {dimension_semantics = [], scalar_prefetch = 0 : i64, scratch_operands = 0 : i64, tpu.core_type = #tpu.core_type<tc>} {
    %c0 = arith.constant 0 : index
    %c0_0 = arith.constant 0 : index
    %0 = vector.load %arg1[%c0, %c0_0] : memref<32x128xf32, #tpu.memory_space<vmem>>, vector<32x128xf32>
    %c0_1 = arith.constant 0 : index
    %c0_2 = arith.constant 0 : index
    %1 = vector.load %arg0[%c0_1, %c0_2] : memref<288x32xf32, #tpu.memory_space<vmem>>, vector<32x32xf32>
    %cst = arith.constant dense<0.000000e+00> : vector<32x128xf32>
    %2 = tpu.matmul %1, %0, %cst {dimension_numbers = #tpu.dot_dimension_numbers<[1], [0], [0], [1], [0, 0, 1, 1], [], []>} : vector<32x32xf32>, vector<32x128xf32>, vector<32x128xf32> -> vector<32x128xf32>
    %c0_3 = arith.constant 0 : index
    %c0_4 = arith.constant 0 : index
    %c0_5 = arith.constant 0 : index
    %3 = vector.load %arg2[%c0_3, %c0_4, %c0_5] : memref<9x128x256xf32, #tpu.memory_space<vmem>>, vector<1x128x256xf32>
    %4 = vector.shape_cast %3 : vector<1x128x256xf32> to vector<128x256xf32>
    %cst_6 = arith.constant dense<0.000000e+00> : vector<32x256xf32>
    %5 = tpu.matmul %2, %4, %cst_6 {dimension_numbers = #tpu.dot_dimension_numbers<[1], [0], [0], [1], [0, 0, 1, 1], [], []>} : vector<32x128xf32>, vector<128x256xf32>, vector<32x256xf32> -> vector<32x256xf32>
    %c32 = arith.constant 32 : index
    %c0_7 = arith.constant 0 : index
    %6 = vector.load %arg0[%c32, %c0_7] : memref<288x32xf32, #tpu.memory_space<vmem>>, vector<32x32xf32>
    %cst_8 = arith.constant dense<0.000000e+00> : vector<32x128xf32>
    %7 = tpu.matmul %6, %0, %cst_8 {dimension_numbers = #tpu.dot_dimension_numbers<[1], [0], [0], [1], [0, 0, 1, 1], [], []>} : vector<32x32xf32>, vector<32x128xf32>, vector<32x128xf32> -> vector<32x128xf32>
    %c1 = arith.constant 1 : index
    %c0_9 = arith.constant 0 : index
    %c0_10 = arith.constant 0 : index
    %8 = vector.load %arg2[%c1, %c0_9, %c0_10] : memref<9x128x256xf32, #tpu.memory_space<vmem>>, vector<1x128x256xf32>
    %9 = vector.shape_cast %8 : vector<1x128x256xf32> to vector<128x256xf32>
    %cst_11 = arith.constant dense<0.000000e+00> : vector<32x256xf32>
    %10 = tpu.matmul %7, %9, %cst_11 {dimension_numbers = #tpu.dot_dimension_numbers<[1], [0], [0], [1], [0, 0, 1, 1], [], []>} : vector<32x128xf32>, vector<128x256xf32>, vector<32x256xf32> -> vector<32x256xf32>
    %11 = arith.addf %5, %10 : vector<32x256xf32>
    %c64 = arith.constant 64 : index
    %c0_12 = arith.constant 0 : index
    %12 = vector.load %arg0[%c64, %c0_12] : memref<288x32xf32, #tpu.memory_space<vmem>>, vector<32x32xf32>
    %cst_13 = arith.constant dense<0.000000e+00> : vector<32x128xf32>
    %13 = tpu.matmul %12, %0, %cst_13 {dimension_numbers = #tpu.dot_dimension_numbers<[1], [0], [0], [1], [0, 0, 1, 1], [], []>} : vector<32x32xf32>, vector<32x128xf32>, vector<32x128xf32> -> vector<32x128xf32>
    %c2 = arith.constant 2 : index
    %c0_14 = arith.constant 0 : index
    %c0_15 = arith.constant 0 : index
    %14 = vector.load %arg2[%c2, %c0_14, %c0_15] : memref<9x128x256xf32, #tpu.memory_space<vmem>>, vector<1x128x256xf32>
    %15 = vector.shape_cast %14 : vector<1x128x256xf32> to vector<128x256xf32>
    %cst_16 = arith.constant dense<0.000000e+00> : vector<32x256xf32>
    %16 = tpu.matmul %13, %15, %cst_16 {dimension_numbers = #tpu.dot_dimension_numbers<[1], [0], [0], [1], [0, 0, 1, 1], [], []>} : vector<32x128xf32>, vector<128x256xf32>, vector<32x256xf32> -> vector<32x256xf32>
    %17 = arith.addf %11, %16 : vector<32x256xf32>
    %c96 = arith.constant 96 : index
    %c0_17 = arith.constant 0 : index
    %18 = vector.load %arg0[%c96, %c0_17] : memref<288x32xf32, #tpu.memory_space<vmem>>, vector<32x32xf32>
    %cst_18 = arith.constant dense<0.000000e+00> : vector<32x128xf32>
    %19 = tpu.matmul %18, %0, %cst_18 {dimension_numbers = #tpu.dot_dimension_numbers<[1], [0], [0], [1], [0, 0, 1, 1], [], []>} : vector<32x32xf32>, vector<32x128xf32>, vector<32x128xf32> -> vector<32x128xf32>
    %c3 = arith.constant 3 : index
    %c0_19 = arith.constant 0 : index
    %c0_20 = arith.constant 0 : index
    %20 = vector.load %arg2[%c3, %c0_19, %c0_20] : memref<9x128x256xf32, #tpu.memory_space<vmem>>, vector<1x128x256xf32>
    %21 = vector.shape_cast %20 : vector<1x128x256xf32> to vector<128x256xf32>
    %cst_21 = arith.constant dense<0.000000e+00> : vector<32x256xf32>
    %22 = tpu.matmul %19, %21, %cst_21 {dimension_numbers = #tpu.dot_dimension_numbers<[1], [0], [0], [1], [0, 0, 1, 1], [], []>} : vector<32x128xf32>, vector<128x256xf32>, vector<32x256xf32> -> vector<32x256xf32>
    %23 = arith.addf %17, %22 : vector<32x256xf32>
    %c128 = arith.constant 128 : index
    %c0_22 = arith.constant 0 : index
    %24 = vector.load %arg0[%c128, %c0_22] : memref<288x32xf32, #tpu.memory_space<vmem>>, vector<32x32xf32>
    %cst_23 = arith.constant dense<0.000000e+00> : vector<32x128xf32>
    %25 = tpu.matmul %24, %0, %cst_23 {dimension_numbers = #tpu.dot_dimension_numbers<[1], [0], [0], [1], [0, 0, 1, 1], [], []>} : vector<32x32xf32>, vector<32x128xf32>, vector<32x128xf32> -> vector<32x128xf32>
    %c4 = arith.constant 4 : index
    %c0_24 = arith.constant 0 : index
    %c0_25 = arith.constant 0 : index
    %26 = vector.load %arg2[%c4, %c0_24, %c0_25] : memref<9x128x256xf32, #tpu.memory_space<vmem>>, vector<1x128x256xf32>
    %27 = vector.shape_cast %26 : vector<1x128x256xf32> to vector<128x256xf32>
    %cst_26 = arith.constant dense<0.000000e+00> : vector<32x256xf32>
    %28 = tpu.matmul %25, %27, %cst_26 {dimension_numbers = #tpu.dot_dimension_numbers<[1], [0], [0], [1], [0, 0, 1, 1], [], []>} : vector<32x128xf32>, vector<128x256xf32>, vector<32x256xf32> -> vector<32x256xf32>
    %29 = arith.addf %23, %28 : vector<32x256xf32>
    %c160 = arith.constant 160 : index
    %c0_27 = arith.constant 0 : index
    %30 = vector.load %arg0[%c160, %c0_27] : memref<288x32xf32, #tpu.memory_space<vmem>>, vector<32x32xf32>
    %cst_28 = arith.constant dense<0.000000e+00> : vector<32x128xf32>
    %31 = tpu.matmul %30, %0, %cst_28 {dimension_numbers = #tpu.dot_dimension_numbers<[1], [0], [0], [1], [0, 0, 1, 1], [], []>} : vector<32x32xf32>, vector<32x128xf32>, vector<32x128xf32> -> vector<32x128xf32>
    %c5 = arith.constant 5 : index
    %c0_29 = arith.constant 0 : index
    %c0_30 = arith.constant 0 : index
    %32 = vector.load %arg2[%c5, %c0_29, %c0_30] : memref<9x128x256xf32, #tpu.memory_space<vmem>>, vector<1x128x256xf32>
    %33 = vector.shape_cast %32 : vector<1x128x256xf32> to vector<128x256xf32>
    %cst_31 = arith.constant dense<0.000000e+00> : vector<32x256xf32>
    %34 = tpu.matmul %31, %33, %cst_31 {dimension_numbers = #tpu.dot_dimension_numbers<[1], [0], [0], [1], [0, 0, 1, 1], [], []>} : vector<32x128xf32>, vector<128x256xf32>, vector<32x256xf32> -> vector<32x256xf32>
    %35 = arith.addf %29, %34 : vector<32x256xf32>
    %c192 = arith.constant 192 : index
    %c0_32 = arith.constant 0 : index
    %36 = vector.load %arg0[%c192, %c0_32] : memref<288x32xf32, #tpu.memory_space<vmem>>, vector<32x32xf32>
    %cst_33 = arith.constant dense<0.000000e+00> : vector<32x128xf32>
    %37 = tpu.matmul %36, %0, %cst_33 {dimension_numbers = #tpu.dot_dimension_numbers<[1], [0], [0], [1], [0, 0, 1, 1], [], []>} : vector<32x32xf32>, vector<32x128xf32>, vector<32x128xf32> -> vector<32x128xf32>
    %c6 = arith.constant 6 : index
    %c0_34 = arith.constant 0 : index
    %c0_35 = arith.constant 0 : index
    %38 = vector.load %arg2[%c6, %c0_34, %c0_35] : memref<9x128x256xf32, #tpu.memory_space<vmem>>, vector<1x128x256xf32>
    %39 = vector.shape_cast %38 : vector<1x128x256xf32> to vector<128x256xf32>
    %cst_36 = arith.constant dense<0.000000e+00> : vector<32x256xf32>
    %40 = tpu.matmul %37, %39, %cst_36 {dimension_numbers = #tpu.dot_dimension_numbers<[1], [0], [0], [1], [0, 0, 1, 1], [], []>} : vector<32x128xf32>, vector<128x256xf32>, vector<32x256xf32> -> vector<32x256xf32>
    %41 = arith.addf %35, %40 : vector<32x256xf32>
    %c224 = arith.constant 224 : index
    %c0_37 = arith.constant 0 : index
    %42 = vector.load %arg0[%c224, %c0_37] : memref<288x32xf32, #tpu.memory_space<vmem>>, vector<32x32xf32>
    %cst_38 = arith.constant dense<0.000000e+00> : vector<32x128xf32>
    %43 = tpu.matmul %42, %0, %cst_38 {dimension_numbers = #tpu.dot_dimension_numbers<[1], [0], [0], [1], [0, 0, 1, 1], [], []>} : vector<32x32xf32>, vector<32x128xf32>, vector<32x128xf32> -> vector<32x128xf32>
    %c7 = arith.constant 7 : index
    %c0_39 = arith.constant 0 : index
    %c0_40 = arith.constant 0 : index
    %44 = vector.load %arg2[%c7, %c0_39, %c0_40] : memref<9x128x256xf32, #tpu.memory_space<vmem>>, vector<1x128x256xf32>
    %45 = vector.shape_cast %44 : vector<1x128x256xf32> to vector<128x256xf32>
    %cst_41 = arith.constant dense<0.000000e+00> : vector<32x256xf32>
    %46 = tpu.matmul %43, %45, %cst_41 {dimension_numbers = #tpu.dot_dimension_numbers<[1], [0], [0], [1], [0, 0, 1, 1], [], []>} : vector<32x128xf32>, vector<128x256xf32>, vector<32x256xf32> -> vector<32x256xf32>
    %47 = arith.addf %41, %46 : vector<32x256xf32>
    %c256 = arith.constant 256 : index
    %c0_42 = arith.constant 0 : index
    %48 = vector.load %arg0[%c256, %c0_42] : memref<288x32xf32, #tpu.memory_space<vmem>>, vector<32x32xf32>
    %cst_43 = arith.constant dense<0.000000e+00> : vector<32x128xf32>
    %49 = tpu.matmul %48, %0, %cst_43 {dimension_numbers = #tpu.dot_dimension_numbers<[1], [0], [0], [1], [0, 0, 1, 1], [], []>} : vector<32x32xf32>, vector<32x128xf32>, vector<32x128xf32> -> vector<32x128xf32>
    %c8 = arith.constant 8 : index
    %c0_44 = arith.constant 0 : index
    %c0_45 = arith.constant 0 : index
    %50 = vector.load %arg2[%c8, %c0_44, %c0_45] : memref<9x128x256xf32, #tpu.memory_space<vmem>>, vector<1x128x256xf32>
    %51 = vector.shape_cast %50 : vector<1x128x256xf32> to vector<128x256xf32>
    %cst_46 = arith.constant dense<0.000000e+00> : vector<32x256xf32>
    %52 = tpu.matmul %49, %51, %cst_46 {dimension_numbers = #tpu.dot_dimension_numbers<[1], [0], [0], [1], [0, 0, 1, 1], [], []>} : vector<32x128xf32>, vector<128x256xf32>, vector<32x256xf32> -> vector<32x256xf32>
    %53 = arith.addf %47, %52 : vector<32x256xf32>
    %c0_47 = arith.constant 0 : index
    %c0_48 = arith.constant 0 : index
    %54 = vector.load %arg3[%c0_47, %c0_48] : memref<1x256xf32, #tpu.memory_space<vmem>>, vector<1x256xf32>
    %55 = vector.broadcast %54 : vector<1x256xf32> to vector<32x256xf32>
    %56 = arith.mulf %53, %55 : vector<32x256xf32>
    %c0_49 = arith.constant 0 : index
    %c0_50 = arith.constant 0 : index
    %57 = vector.load %arg4[%c0_49, %c0_50] : memref<1x256xf32, #tpu.memory_space<vmem>>, vector<1x256xf32>
    %58 = vector.broadcast %57 : vector<1x256xf32> to vector<32x256xf32>
    %59 = arith.addf %56, %58 : vector<32x256xf32>
    %cst_51 = arith.constant 0.000000e+00 : f32
    %60 = vector.broadcast %cst_51 : f32 to vector<32x256xf32>
    %61 = arith.cmpf ogt, %59, %60 : vector<32x256xf32>
    %cst_52 = arith.constant 1.000000e-01 : f32
    %62 = vector.broadcast %cst_52 : f32 to vector<32x256xf32>
    %63 = arith.mulf %62, %59 : vector<32x256xf32>
    %64 = arith.select %61, %59, %63 : vector<32x256xi1>, vector<32x256xf32>
    %c0_53 = arith.constant 0 : index
    %c0_54 = arith.constant 0 : index
    %65 = vector.load %arg5[%c0_53, %c0_54] : memref<32x32xf32, #tpu.memory_space<vmem>>, vector<32x32xf32>
    %cst_55 = arith.constant dense<0.000000e+00> : vector<32x256xf32>
    %66 = tpu.matmul %65, %64, %cst_55 {dimension_numbers = #tpu.dot_dimension_numbers<[1], [0], [0], [1], [0, 0, 1, 1], [], []>} : vector<32x32xf32>, vector<32x256xf32>, vector<32x256xf32> -> vector<32x256xf32>
    %67 = vector.extract_strided_slice %66 {offsets = [0, 0], sizes = [8, 256], strides = [1, 1]} : vector<32x256xf32> to vector<8x256xf32>
    %68 = vector.extract_strided_slice %66 {offsets = [8, 0], sizes = [8, 256], strides = [1, 1]} : vector<32x256xf32> to vector<8x256xf32>
    %69 = arith.maximumf %67, %68 : vector<8x256xf32>
    %70 = vector.extract_strided_slice %66 {offsets = [16, 0], sizes = [8, 256], strides = [1, 1]} : vector<32x256xf32> to vector<8x256xf32>
    %71 = vector.extract_strided_slice %66 {offsets = [24, 0], sizes = [8, 256], strides = [1, 1]} : vector<32x256xf32> to vector<8x256xf32>
    %72 = arith.maximumf %70, %71 : vector<8x256xf32>
    %73 = arith.maximumf %69, %72 : vector<8x256xf32>
    %c0_56 = arith.constant 0 : index
    %c0_57 = arith.constant 0 : index
    %74 = vector.load %arg6[%c0_56, %c0_57] : memref<2x8xf32, #tpu.memory_space<vmem>>, vector<2x8xf32>
    %cst_58 = arith.constant dense<0.000000e+00> : vector<2x256xf32>
    %75 = tpu.matmul %74, %73, %cst_58 {dimension_numbers = #tpu.dot_dimension_numbers<[1], [0], [0], [1], [0, 0, 1, 1], [], []>} : vector<2x8xf32>, vector<8x256xf32>, vector<2x256xf32> -> vector<2x256xf32>
    %c0_59 = arith.constant 0 : index
    %c0_60 = arith.constant 0 : index
    %76 = vector.load %arg7[%c0_59, %c0_60] : memref<256x512xf32, #tpu.memory_space<vmem>>, vector<256x512xf32>
    %cst_61 = arith.constant dense<0.000000e+00> : vector<2x512xf32>
    %77 = tpu.matmul %75, %76, %cst_61 {dimension_numbers = #tpu.dot_dimension_numbers<[1], [0], [0], [1], [0, 0, 1, 1], [], []>} : vector<2x256xf32>, vector<256x512xf32>, vector<2x512xf32> -> vector<2x512xf32>
    %c0_62 = arith.constant 0 : index
    %c0_63 = arith.constant 0 : index
    %78 = vector.load %arg8[%c0_62, %c0_63] : memref<1x512xf32, #tpu.memory_space<vmem>>, vector<1x512xf32>
    %79 = vector.broadcast %78 : vector<1x512xf32> to vector<2x512xf32>
    %80 = arith.addf %77, %79 : vector<2x512xf32>
    %cst_64 = arith.constant 0.000000e+00 : f32
    %81 = vector.broadcast %cst_64 : f32 to vector<2x512xf32>
    %82 = arith.cmpf ogt, %80, %81 : vector<2x512xf32>
    %cst_65 = arith.constant 1.000000e-01 : f32
    %83 = vector.broadcast %cst_65 : f32 to vector<2x512xf32>
    %84 = arith.mulf %83, %80 : vector<2x512xf32>
    %85 = arith.select %82, %80, %84 : vector<2x512xi1>, vector<2x512xf32>
    %c0_66 = arith.constant 0 : index
    %c0_67 = arith.constant 0 : index
    %86 = vector.load %arg9[%c0_66, %c0_67] : memref<512x128xf32, #tpu.memory_space<vmem>>, vector<512x128xf32>
    %cst_68 = arith.constant dense<0.000000e+00> : vector<2x128xf32>
    %87 = tpu.matmul %85, %86, %cst_68 {dimension_numbers = #tpu.dot_dimension_numbers<[1], [0], [0], [1], [0, 0, 1, 1], [], []>} : vector<2x512xf32>, vector<512x128xf32>, vector<2x128xf32> -> vector<2x128xf32>
    %c0_69 = arith.constant 0 : index
    %c0_70 = arith.constant 0 : index
    %88 = vector.load %arg10[%c0_69, %c0_70] : memref<1x128xf32, #tpu.memory_space<vmem>>, vector<1x128xf32>
    %89 = vector.broadcast %88 : vector<1x128xf32> to vector<2x128xf32>
    %90 = arith.addf %87, %89 : vector<2x128xf32>
    %c0_71 = arith.constant 0 : index
    %c0_72 = arith.constant 0 : index
    %91 = vector.load %arg11[%c0_71, %c0_72] : memref<2x128xf32, #tpu.memory_space<vmem>>, vector<2x128xf32>
    tpu.vector_store %arg11[%c0_71, %c0_72], %90 {strides = array<i32>} : memref<2x128xf32, #tpu.memory_space<vmem>>, vector<2x128xf32>,
    return
  }
}

</mosaic_0001>

<bundles_post_ra>
// kernel: simple_2cnn_forward.1
= control target key start
LH: loop header
LB: loop body
LE: loop exit
PB: predicated region body
PF: predicated region fallthrough
CT: control target
= control target key end

     0   :  { %vm47_vm0 = vcmask 261120   ;;  %s6007_s0 = inlined_call_operand.vmem [shape: f32[288,32], index: 0, kind: input, shape index: {}]   ;;  %s6008_s1 = inlined_call_operand.vmem [shape: f32[32,128], index: 1, kind: input, shape index: {}]   ;;  %s6009_s2 = inlined_call_operand.vmem [shape: f32[9,128,256], index: 2, kind: input, shape index: {}]   ;;  %s6010_s3 = inlined_call_operand.vmem [shape: f32[1,256], index: 3, kind: input, shape index: {}]   ;;  %s6011_s4 = inlined_call_operand.vmem [shape: f32[1,256], index: 4, kind: input, shape index: {}]   ;;  %s6012_s5 = inlined_call_operand.vmem [shape: f32[32,32], index: 5, kind: input, shape index: {}]   ;;  %s6013_s6 = inlined_call_operand.vmem [shape: f32[2,8], index: 6, kind: input, shape index: {}]   ;;  %s6014_s7 = inlined_call_operand.vmem [shape: f32[256,512], index: 7, kind: input, shape index: {}]   ;;  %s6015_s8 = inlined_call_operand.vmem [shape: f32[1,512], index: 8, kind: input, shape index: {}]   ;;  %s6016_s9 = inlined_call_operand.vmem [shape: f32[512,128], index: 9, kind: input, shape index: {}]   ;;  %s6017_s10 = inlined_call_operand.vmem [shape: f32[1,128], index: 10, kind: input, shape index: {}]   ;;  %s6018_s11 = inlined_call_operand.hbm [shape: f32[2,128], index: 11, kind: output, shape index: {}]  }
   0x1   :  { %v39_v0 = vld [vmem:[%s6008_s1] sm:$0xff]  ;;  %v40_v1 = vld [vmem:[%s6008_s1 + $0x8] sm:$0xff]  ;;  %v41_v2 = vld [vmem:[%s6008_s1 + $0x10] sm:$0xff] }
   0x2   :  { %v4174_v3 = vpack.c.bf16 %v40_v1, %v39_v0  ;;  %v42_v4 = vld [vmem:[%s6008_s1 + $0x18] sm:$0xff]  ;;  %v43_v5 = vld [vmem:[%s6007_s0] sm:$0xff]  ;;  %v44_v7 = vld [vmem:[%s6007_s0 + $0x8] sm:$0xff] }
   0x3   :  { %v4182_v6 = vpack.c.bf16 %v42_v4, %v41_v2  ;;  %3335 = vmatprep.mubr.msk.f32.mxu1 %vm47_vm0, %v43_v5  ;;  %v45_v8 = vld [vmem:[%s6007_s0 + $0x10] sm:$0xff]  ;;  %v2896_v9 = vld [vmem:[%s6009_s2 + $0x108] sm:$0xff]  ;;  %v2898_v10 = vld [vmem:[%s6009_s2 + $0x118] sm:$0xff] }
   0x4   :  { %3454 = vmatprep.subr.bf16.mxu1 %v4174_v3  ;;  %v3469_v11 = vpack.c.bf16 %v2898_v10, %v2896_v9  ;;  %v2895_v12 = vld [vmem:[%s6009_s2 + $0x100] sm:$0xff]  ;;  %v2897_v13 = vld [vmem:[%s6009_s2 + $0x110] sm:$0xff]  ;;  %v2900_v14 = vld [vmem:[%s6009_s2 + $0x128] sm:$0xff] }
   0x5   :  { %3456 = vmatpush3.bf16.msra.mxu1 %v4174_v3  ;;  %v3471_v15 = vpack.c.bf16 %v2897_v13, %v2895_v12  ;;  %v2902_v16 = vld [vmem:[%s6009_s2 + $0x138] sm:$0xff]  ;;  %v2899_v17 = vld [vmem:[%s6009_s2 + $0x120] sm:$0xff]  ;;  %v2901_v18 = vld [vmem:[%s6009_s2 + $0x130] sm:$0xff] }
   0x6   :  { %3458 = vmatprep.subr.bf16.mxu1 %v4182_v6  ;;  %v46_v19 = vld [vmem:[%s6007_s0 + $0x18] sm:$0xff]  ;;  %v3473_v20 = vpack.c.bf16 %v2902_v16, %v2900_v14  ;;  %v2904_v21 = vld [vmem:[%s6009_s2 + $0x148] sm:$0xff]  ;;  %v177_v23 = vld [vmem:[%s6007_s0 + $0x20] sm:$0xff]  ;;  %3470 = vmatprep.subr.bf16.mxu0 %v3469_v11  ;;  %v3475_v24 = vpack.c.bf16 %v2901_v18, %v2899_v17 }
   0x7   :  { %v2906_v22 = vld [vmem:[%s6009_s2 + $0x158] sm:$0xff]  ;;  %3472 = vmatpush1.bf16.msra.mxu0 %v3471_v15  ;;  %v2903_v26 = vld [vmem:[%s6009_s2 + $0x140] sm:$0xff]  ;;  %v2905_v27 = vld [vmem:[%s6009_s2 + $0x150] sm:$0xff] }
   0x8   :  { %3474 = vmatprep.subr.bf16.mxu0 %v3473_v20  ;;  %v3477_v25 = vpack.c.bf16 %v2906_v22, %v2904_v21  ;;  %v178_v28 = vld [vmem:[%s6007_s0 + $0x28] sm:$0xff]  ;;  %v2910_v30 = vld [vmem:[%s6009_s2 + $0x178] sm:$0xff]  ;;  %v179_v31 = vld [vmem:[%s6007_s0 + $0x30] sm:$0xff]  ;;  %v3479_v32 = vpack.c.bf16 %v2905_v27, %v2903_v26 }
   0x9   :  { %3460 = vmatpush3.bf16.msra.mxu1 %v4182_v6  ;;  %v2908_v29 = vld [vmem:[%s6009_s2 + $0x168] sm:$0xff] }
   0xa   :  { %3462 = vmatprep.subr.bf16.mxu1 %v4174_v3 }
   0xb   :  { %3476 = vmatpush1.bf16.msra.mxu0 %v3475_v24 }
   0xc   :  { %3336 = vmatmul.mubr.msk.f32.vlgmr.msra.gmra.mrb[0].mxu1 %vm47_vm0, %v44_v7 }
   0xd   :  { %3464 = vmatpush3.bf16.msra.mxu1 %v4174_v3  ;;  %3338 = vmatprep.mubr.msk.f32.mxu1 %vm47_vm0, %v45_v8 }
   0xe   :  { %3466 = vmatprep.subr.bf16.mxu1 %v4182_v6 }
  0x10   :  { %3339 = vmatmul.mubr.msk.f32.gmra.mrb[2].mxu1 %vm47_vm0, %v46_v19 }
  0x11   :  { %3468 = vmatpush3.bf16.msra.mxu1 %v4182_v6  ;;  %3349 = vmatprep.mubr.msk.f32.mxu1 %vm47_vm0, %v177_v23 }
  0x12   :  { %3534 = vmatprep.subr.bf16.mxu1 %v4174_v3 }
  0x13   :  { %16 = vsyncpa [#allocation3], 0  ;;  %3478 = vmatprep.subr.bf16.mxu0 %v3477_v25  ;;  %v3481_v33 = vpack.c.bf16 %v2910_v30, %v2908_v29  ;;  %v2907_v34 = vld [vmem:[%s6009_s2 + $0x160] sm:$0xff]  ;;  %v2909_v35 = vld [vmem:[%s6009_s2 + $0x170] sm:$0xff]  ;;  %v4103_v23 = vmov 0.0   ;;  %vm2282_vm9 = vcmask 64512  }
  0x14   :  { %3350 = vmatmul.mubr.msk.f32.vlgmr.msra.gmra.mrb[4].mxu1 %vm47_vm0, %v178_v28  ;;  %v180_v36 = vld [vmem:[%s6007_s0 + $0x38] sm:$0xff]  ;;  %v2912_v37 = vld [vmem:[%s6009_s2 + $0x188] sm:$0xff]  ;;  %v489_v39 = vld [vmem:[%s6007_s0 + $0x40] sm:$0xff]  ;;  %3480 = vmatpush1.bf16.msra.mxu0 %v3479_v32  ;;  %v3483_v40 = vpack.c.bf16 %v2909_v35, %v2907_v34 }
  0x15   :  { %3352 = vmatprep.mubr.msk.f32.mxu1 %vm47_vm0, %v179_v31  ;;  %3536 = vmatpush3.bf16.msra.mxu1 %v4174_v3  ;;  %v2914_v38 = vld [vmem:[%s6009_s2 + $0x198] sm:$0xff]  ;;  %v2911_v42 = vld [vmem:[%s6009_s2 + $0x180] sm:$0xff]  ;;  %v2913_v43 = vld [vmem:[%s6009_s2 + $0x190] sm:$0xff] }
  0x16   :  { %3538 = vmatprep.subr.bf16.mxu1 %v4182_v6  ;;  %3482 = vmatprep.subr.bf16.mxu0 %v3481_v33  ;;  %v3485_v41 = vpack.c.bf16 %v2914_v38, %v2912_v37  ;;  %v490_v44 = vld [vmem:[%s6007_s0 + $0x48] sm:$0xff]  ;;  %v2918_v46 = vld [vmem:[%s6009_s2 + $0x1b8] sm:$0xff]  ;;  %v491_v47 = vld [vmem:[%s6007_s0 + $0x50] sm:$0xff]  ;;  %v3487_v48 = vpack.c.bf16 %v2913_v43, %v2911_v42 }
  0x17   :  { %v2916_v45 = vld [vmem:[%s6009_s2 + $0x1a8] sm:$0xff]  ;;  %v2915_v50 = vld [vmem:[%s6009_s2 + $0x1a0] sm:$0xff]  ;;  %v2917_v51 = vld [vmem:[%s6009_s2 + $0x1b0] sm:$0xff]  ;;  %375 = vmatprep.mubr.f32.mxu0 %v4103_v23 }
  0x18   :  { %3353 = vmatmul.mubr.msk.f32.gmra.mrb[6].mxu1 %vm47_vm0, %v180_v36  ;;  %3484 = vmatpush1.bf16.msra.mxu0 %v3483_v40  ;;  %v3489_v49 = vpack.c.bf16 %v2918_v46, %v2916_v45  ;;  %v492_v52 = vld [vmem:[%s6007_s0 + $0x58] sm:$0xff]  ;;  %v720_v53 = vld [vmem:[%s6007_s0 + $0x60] sm:$0xff]  ;;  %v3491_v54 = vpack.c.bf16 %v2917_v51, %v2915_v50  ;;  %v721_v55 = vld [vmem:[%s6007_s0 + $0x68] sm:$0xff] }
  0x19   :  { %3540 = vmatpush3.bf16.msra.mxu1 %v4182_v6  ;;  %3363 = vmatprep.mubr.msk.f32.mxu1 %vm47_vm0, %v489_v39  ;;  %v722_v56 = vld [vmem:[%s6007_s0 + $0x70] sm:$0xff]  ;;  %v723_v57 = vld [vmem:[%s6007_s0 + $0x78] sm:$0xff]  ;;  %v951_v58 = vld [vmem:[%s6007_s0 + $0x80] sm:$0xff] }
  0x1a   :  { %3574 = vmatprep.subr.bf16.mxu1 %v4174_v3  ;;  %3486 = vmatprep.subr.bf16.mxu0 %v3485_v41  ;;  %v952_v59 = vld [vmem:[%s6007_s0 + $0x88] sm:$0xff]  ;;  %v953_v60 = vld [vmem:[%s6007_s0 + $0x90] sm:$0xff]  ;;  %v954_v61 = vld [vmem:[%s6007_s0 + $0x98] sm:$0xff] }
  0x1b   :  { %v1182_v62 = vld [vmem:[%s6007_s0 + $0xa0] sm:$0xff]  ;;  %v1183_v63 = vld [vmem:[%s6007_s0 + $0xa8] sm:$0xff]  ;;  %v1184_v0 = vld [vmem:[%s6007_s0 + $0xb0] sm:$0xff] }
  0x1c   :  { %3364 = vmatmul.mubr.msk.f32.vlgmr.msra.gmra.mrb[8].mxu1 %vm47_vm0, %v490_v44  ;;  %3488 = vmatpush1.bf16.msra.mxu0 %v3487_v48  ;;  %v1185_v1 = vld [vmem:[%s6007_s0 + $0xb8] sm:$0xff]  ;;  %v1413_v2 = vld [vmem:[%s6007_s0 + $0xc0] sm:$0xff]  ;;  %v1414_v4 = vld [vmem:[%s6007_s0 + $0xc8] sm:$0xff] }
  0x1d   :  { %3366 = vmatprep.mubr.msk.f32.mxu1 %vm47_vm0, %v491_v47  ;;  %3576 = vmatpush3.bf16.msra.mxu1 %v4174_v3  ;;  %v2920_v5 = vld [vmem:[%s6009_s2 + $0x1c8] sm:$0xff]  ;;  %v2922_v7 = vld [vmem:[%s6009_s2 + $0x1d8] sm:$0xff]  ;;  %v2919_v9 = vld [vmem:[%s6009_s2 + $0x1c0] sm:$0xff] }
  0x1e   :  { %3578 = vmatprep.subr.bf16.mxu1 %v4182_v6  ;;  %3490 = vmatprep.subr.bf16.mxu0 %v3489_v49  ;;  %v3493_v8 = vpack.c.bf16 %v2922_v7, %v2920_v5  ;;  %v2921_v10 = vld [vmem:[%s6009_s2 + $0x1d0] sm:$0xff]  ;;  %v2924_v12 = vld [vmem:[%s6009_s2 + $0x1e8] sm:$0xff]  ;;  %v2926_v13 = vld [vmem:[%s6009_s2 + $0x1f8] sm:$0xff] }
  0x1f   :  { %v3495_v11 = vpack.c.bf16 %v2921_v10, %v2919_v9  ;;  %v3497_v14 = vpack.c.bf16 %v2926_v13, %v2924_v12  ;;  %v2923_v15 = vld [vmem:[%s6009_s2 + $0x1e0] sm:$0xff]  ;;  %v2925_v16 = vld [vmem:[%s6009_s2 + $0x1f0] sm:$0xff]  ;;  %v146_v19 = vld [vmem:[%s6009_s2 + $0x8] sm:$0xff] }
  0x20   :  { %3367 = vmatmul.mubr.msk.f32.gmra.mrb[10].mxu1 %vm47_vm0, %v492_v52  ;;  %3492 = vmatpush1.bf16.msra.mxu0 %v3491_v54  ;;  %v3499_v17 = vpack.c.bf16 %v2925_v16, %v2923_v15  ;;  %v1415_v18 = vld [vmem:[%s6007_s0 + $0xd0] sm:$0xff]  ;;  %v148_v20 = vld [vmem:[%s6009_s2 + $0x18] sm:$0xff]  ;;  %v1644_v24 = vld [vmem:[%s6007_s0 + $0xe0] sm:$0xff] }
  0x21   :  { %3580 = vmatpush3.bf16.msra.mxu1 %v4182_v6  ;;  %3377 = vmatprep.mubr.msk.f32.mxu1 %vm47_vm0, %v720_v53  ;;  %v1416_v21 = vld [vmem:[%s6007_s0 + $0xd8] sm:$0xff]  ;;  %v3501_v22 = vpack.c.bf16 %v148_v20, %v146_v19  ;;  %v1645_v25 = vld [vmem:[%s6007_s0 + $0xe8] sm:$0xff]  ;;  %v1646_v26 = vld [vmem:[%s6007_s0 + $0xf0] sm:$0xff] }
  0x22   :  { %3614 = vmatprep.subr.bf16.mxu1 %v4174_v3  ;;  %3494 = vmatprep.subr.bf16.mxu0 %v3493_v8  ;;  %v1647_v27 = vld [vmem:[%s6007_s0 + $0xf8] sm:$0xff]  ;;  %v1877_v28 = vld [vmem:[%s6007_s0 + $0x110] sm:$0xff]  ;;  %v145_v33 = vld [vmem:[%s6009_s2] sm:$0xff] }
  0x23   :  { %v1878_v29 = vld [vmem:[%s6007_s0 + $0x118] sm:$0xff]  ;;  %v147_v34 = vld [vmem:[%s6009_s2 + $0x10] sm:$0xff]  ;;  %v150_v36 = vld [vmem:[%s6009_s2 + $0x28] sm:$0xff] }
  0x24   :  { %3378 = vmatmul.mubr.msk.f32.vlgmr.msra.gmra.mrb[12].mxu1 %vm47_vm0, %v721_v55  ;;  %3496 = vmatpush1.bf16.msra.mxu0 %v3495_v11  ;;  %v152_v37 = vld [vmem:[%s6009_s2 + $0x38] sm:$0xff]  ;;  %v3503_v38 = vpack.c.bf16 %v147_v34, %v145_v33  ;;  %v149_v41 = vld [vmem:[%s6009_s2 + $0x20] sm:$0xff]  ;;  %v151_v42 = vld [vmem:[%s6009_s2 + $0x30] sm:$0xff] }
  0x25   :  { %3380 = vmatprep.mubr.msk.f32.mxu1 %vm47_vm0, %v722_v56  ;;  %3616 = vmatpush3.bf16.msra.mxu1 %v4174_v3  ;;  %v3505_v40 = vpack.c.bf16 %v152_v37, %v150_v36  ;;  %v154_v44 = vld [vmem:[%s6009_s2 + $0x48] sm:$0xff]  ;;  %v156_v45 = vld [vmem:[%s6009_s2 + $0x58] sm:$0xff]  ;;  %v3507_v46 = vpack.c.bf16 %v151_v42, %v149_v41  ;;  %v153_v48 = vld [vmem:[%s6009_s2 + $0x40] sm:$0xff] }
  0x26   :  { %3618 = vmatprep.subr.bf16.mxu1 %v4182_v6  ;;  %3498 = vmatprep.subr.bf16.mxu0 %v3497_v14  ;;  %v3509_v47 = vpack.c.bf16 %v156_v45, %v154_v44  ;;  %v155_v49 = vld [vmem:[%s6009_s2 + $0x50] sm:$0xff]  ;;  %v158_v51 = vld [vmem:[%s6009_s2 + $0x68] sm:$0xff]  ;;  %v160_v52 = vld [vmem:[%s6009_s2 + $0x78] sm:$0xff] }
  0x27   :  { %v3511_v54 = vpack.c.bf16 %v155_v49, %v153_v48  ;;  %v3513_v55 = vpack.c.bf16 %v160_v52, %v158_v51  ;;  %v157_v56 = vld [vmem:[%s6009_s2 + $0x60] sm:$0xff]  ;;  %v168_v5 = vld [vmem:[%s6009_s2 + $0xb8] sm:$0xff]  ;;  %v167_v11 = vld [vmem:[%s6009_s2 + $0xb0] sm:$0xff] }
  0x28   :  { %3381 = vmatmul.mubr.msk.f32.gmra.mrb[14].mxu1 %vm47_vm0, %v723_v57  ;;  %3500 = vmatpush1.bf16.msra.mxu0 %v3499_v17  ;;  %v159_v57 = vld [vmem:[%s6009_s2 + $0x70] sm:$0xff]  ;;  %v165_v10 = vld [vmem:[%s6009_s2 + $0xa0] sm:$0xff]  ;;  %v170_v13 = vld [vmem:[%s6009_s2 + $0xc8] sm:$0xff] }
  0x29   :  { %3620 = vmatpush3.bf16.msra.mxu1 %v4182_v6  ;;  %3391 = vmatprep.mubr.msk.f32.mxu1 %vm47_vm0, %v951_v58  ;;  %v172_v14 = vld [vmem:[%s6009_s2 + $0xd8] sm:$0xff]  ;;  %v3523_v16 = vpack.c.bf16 %v167_v11, %v165_v10  ;;  %v171_v19 = vld [vmem:[%s6009_s2 + $0xd0] sm:$0xff]  ;;  %v2931_v37 = vld [vmem:[%s6009_s2 + $0x200] sm:$0xff] }
  0x2a   :  { %3654 = vmatprep.subr.bf16.mxu1 %v4174_v3  ;;  %3502 = vmatprep.subr.bf16.mxu0 %v3501_v22  ;;  %v3525_v17 = vpack.c.bf16 %v172_v14, %v170_v13  ;;  %v176_v22 = vld [vmem:[%s6009_s2 + $0xf8] sm:$0xff]  ;;  %v2935_v45 = vld [vmem:[%s6009_s2 + $0x220] sm:$0xff]  ;;  %v2940_v48 = vld [vmem:[%s6009_s2 + $0x248] sm:$0xff] }
  0x2b   :  { %v2938_v41 = vld [vmem:[%s6009_s2 + $0x238] sm:$0xff]  ;;  %v2951_v10 = vld [vmem:[%s6009_s2 + $0x2a0] sm:$0xff]  ;;  %v2953_v11 = vld [vmem:[%s6009_s2 + $0x2b0] sm:$0xff] }
  0x2c   :  { %3392 = vmatmul.mubr.msk.f32.vlgmr.msra.gmra.mrb[16].mxu1 %vm47_vm0, %v952_v59  ;;  %v162_v59 = vld [vmem:[%s6009_s2 + $0x88] sm:$0xff]  ;;  %v2942_v49 = vld [vmem:[%s6009_s2 + $0x258] sm:$0xff]  ;;  %v3563_v14 = vpack.c.bf16 %v2953_v11, %v2951_v10  ;;  %v2987_v10 = vld [vmem:[%s6009_s2 + $0x3a0] sm:$0xff] }
  0x2d   :  { %3394 = vmatprep.mubr.msk.f32.mxu1 %vm47_vm0, %v953_v60  ;;  %3656 = vmatpush3.bf16.msra.mxu1 %v4174_v3  ;;  %v164_v60 = vld [vmem:[%s6009_s2 + $0x98] sm:$0xff]  ;;  %v3549_v52 = vpack.c.bf16 %v2942_v49, %v2940_v48  ;;  %v2956_v13 = vld [vmem:[%s6009_s2 + $0x2c8] sm:$0xff]  ;;  %v2971_v48 = vld [vmem:[%s6009_s2 + $0x320] sm:$0xff] }
  0x2e   :  { %3658 = vmatprep.subr.bf16.mxu1 %v4182_v6  ;;  %v2973_v49 = vld [vmem:[%s6009_s2 + $0x330] sm:$0xff] }
  0x2f   :  { %v2989_v11 = vld [vmem:[%s6009_s2 + $0x3b0] sm:$0xff] }
  0x30   :  { %3395 = vmatmul.mubr.msk.f32.gmra.mrb[18].mxu1 %vm47_vm0, %v954_v61 }
  0x31   :  { %3660 = vmatpush3.bf16.msra.mxu1 %v4182_v6  ;;  %3405 = vmatprep.mubr.msk.f32.mxu1 %vm47_vm0, %v1182_v62  ;;  %v3515_v62 = vpack.c.bf16 %v159_v57, %v157_v56 }
  0x32   :  { %3694 = vmatprep.subr.bf16.mxu1 %v4174_v3 }
  0x34   :  { %3406 = vmatmul.mubr.msk.f32.vlgmr.msra.gmra.mrb[20].mxu1 %vm47_vm0, %v1183_v63  ;;  %v3517_v63 = vpack.c.bf16 %v164_v60, %v162_v59  ;;  %v2943_v59 = vld [vmem:[%s6009_s2 + $0x260] sm:$0xff]  ;;  %v2945_v60 = vld [vmem:[%s6009_s2 + $0x270] sm:$0xff] }
  0x35   :  { %3408 = vmatprep.mubr.msk.f32.mxu1 %vm47_vm0, %v1184_v0  ;;  %3696 = vmatpush3.bf16.msra.mxu1 %v4174_v3  ;;  %v161_v0 = vld [vmem:[%s6009_s2 + $0x80] sm:$0xff] }
  0x36   :  { %3698 = vmatprep.subr.bf16.mxu1 %v4182_v6 }
  0x38   :  { %3409 = vmatmul.mubr.msk.f32.gmra.mrb[22].mxu1 %vm47_vm0, %v1185_v1  ;;  %v163_v1 = vld [vmem:[%s6009_s2 + $0x90] sm:$0xff] }
  0x39   :  { %3700 = vmatpush3.bf16.msra.mxu1 %v4182_v6  ;;  %3419 = vmatprep.mubr.msk.f32.mxu1 %vm47_vm0, %v1413_v2  ;;  %v3519_v8 = vpack.c.bf16 %v163_v1, %v161_v0  ;;  %v2947_v1 = vld [vmem:[%s6009_s2 + $0x280] sm:$0xff] }
  0x3a   :  { %3734 = vmatprep.subr.bf16.mxu1 %v4174_v3 }
  0x3c   :  { %3420 = vmatmul.mubr.msk.f32.vlgmr.msra.gmra.mrb[24].mxu1 %vm47_vm0, %v1414_v4  ;;  %v166_v4 = vld [vmem:[%s6009_s2 + $0xa8] sm:$0xff] }
  0x3d   :  { %3736 = vmatpush3.bf16.msra.mxu1 %v4174_v3  ;;  %3422 = vmatprep.mubr.msk.f32.mxu1 %vm47_vm0, %v1415_v18  ;;  %v3521_v9 = vpack.c.bf16 %v168_v5, %v166_v4  ;;  %v169_v18 = vld [vmem:[%s6009_s2 + $0xc0] sm:$0xff]  ;;  %v2949_v4 = vld [vmem:[%s6009_s2 + $0x290] sm:$0xff]  ;;  %v2952_v5 = vld [vmem:[%s6009_s2 + $0x2a8] sm:$0xff] }
  0x3e   :  { %3738 = vmatprep.subr.bf16.mxu1 %v4182_v6 }
  0x40   :  { %3423 = vmatmul.mubr.msk.f32.gmra.mrb[26].mxu1 %vm47_vm0, %v1416_v21  ;;  %v174_v21 = vld [vmem:[%s6009_s2 + $0xe8] sm:$0xff] }
  0x41   :  { %3740 = vmatpush3.bf16.msra.mxu1 %v4182_v6  ;;  %3433 = vmatprep.mubr.msk.f32.mxu1 %vm47_vm0, %v1644_v24 }
  0x42   :  { %3774 = vmatprep.subr.bf16.mxu1 %v4174_v3 }
  0x44   :  { %3434 = vmatmul.mubr.msk.f32.vlgmr.msra.gmra.mrb[28].mxu1 %vm47_vm0, %v1645_v25  ;;  %v3527_v25 = vpack.c.bf16 %v171_v19, %v169_v18  ;;  %v2955_v18 = vld [vmem:[%s6009_s2 + $0x2c0] sm:$0xff]  ;;  %v2957_v19 = vld [vmem:[%s6009_s2 + $0x2d0] sm:$0xff] }
  0x45   :  { %3776 = vmatpush3.bf16.msra.mxu1 %v4174_v3  ;;  %3436 = vmatprep.mubr.msk.f32.mxu1 %vm47_vm0, %v1646_v26  ;;  %v1875_v3 = vld [vmem:[%s6007_s0 + $0x100] sm:$0xff]  ;;  %v3529_v26 = vpack.c.bf16 %v176_v22, %v174_v21  ;;  %v2960_v22 = vld [vmem:[%s6009_s2 + $0x2e8] sm:$0xff] }
  0x46   :  { %3778 = vmatprep.subr.bf16.mxu1 %v4182_v6 }
  0x48   :  { %3437 = vmatmul.mubr.msk.f32.gmra.mrb[30].mxu1 %vm47_vm0, %v1647_v27  ;;  %v173_v27 = vld [vmem:[%s6009_s2 + $0xe0] sm:$0xff] }
  0x49   :  { %3780 = vmatpush3.bf16.msra.mxu1 %v4182_v6  ;;  %3447 = vmatprep.mubr.msk.f32.mxu1 %vm47_vm0, %v1875_v3  ;;  %v1876_v6 = vld [vmem:[%s6007_s0 + $0x108] sm:$0xff]  ;;  %v175_v3 = vld [vmem:[%s6009_s2 + $0xf0] sm:$0xff] }
  0x4a   :  { %v3531_v34 = vpack.c.bf16 %v175_v3, %v173_v27  ;;  %v2959_v3 = vld [vmem:[%s6009_s2 + $0x2e0] sm:$0xff] }
  0x4c   :  { %3448 = vmatmul.mubr.msk.f32.vlgmr.msra.gmra.mrb[32].mxu1 %vm47_vm0, %v1876_v6 }
  0x4d   :  { %3450 = vmatprep.mubr.msk.f32.mxu1 %vm47_vm0, %v1877_v28  ;;  %v2932_v28 = vld [vmem:[%s6009_s2 + $0x208] sm:$0xff] }
  0x50   :  { %3451 = vmatmul.mubr.msk.f32.gmra.mrb[34].mxu1 %vm47_vm0, %v1878_v29  ;;  %v2934_v29 = vld [vmem:[%s6009_s2 + $0x218] sm:$0xff] }
  0x51   :  { %2250 = vmatprep.mubr.f32.mxu1 %v4103_v23  ;;  %v3541_v36 = vpack.c.bf16 %v2934_v29, %v2932_v28  ;;  %v2961_v28 = vld [vmem:[%s6009_s2 + $0x2f0] sm:$0xff]  ;;  %v2968_v29 = vld [vmem:[%s6009_s2 + $0x308] sm:$0xff] }
  0xdf   :  { %v4465_v30 = vpop.f32.mrb[0].mxu1 }
  0xe0   :  { %v4467_v31 = vpop.f32.mrb[1].mxu1 }
  0xe3   :  { %v4469_v32 = vpop.f32.mrb[2].mxu1 }
  0xe4   :  { %v4477_v35 = vpop.f32.mrb[3].mxu1 }
  0xe7   :  { %v3351_v39 = vpop.f32.mrb[4].mxu1 }
  0xe8   :  { %v259_v43 = vpop.f32.mrb[5].mxu1 }
  0xe9   :  { %376 = vmatmul.mubr.f32.vlgmr.msra.gmra.mrb[0].mxu0 %v259_v43 }
  0xea   :  { %3504 = vmatpush1.bf16.msra.mxu0 %v3503_v38  ;;  %381 = vmatprep.mubr.f32.mxu0 %v4103_v23  ;;  %v2933_v38 = vld [vmem:[%s6009_s2 + $0x210] sm:$0xff] }
  0xeb   :  { %3506 = vmatprep.subr.bf16.mxu0 %v3505_v40  ;;  %v3354_v50 = vpop.f32.mrb[6].mxu1  ;;  %v2936_v40 = vld [vmem:[%s6009_s2 + $0x228] sm:$0xff]  ;;  %v3543_v43 = vpack.c.bf16 %v2933_v38, %v2931_v37  ;;  %v2967_v38 = vld [vmem:[%s6009_s2 + $0x300] sm:$0xff] }
  0xec   :  { %v269_v53 = vpop.f32.mrb[7].mxu1  ;;  %v3545_v44 = vpack.c.bf16 %v2938_v41, %v2936_v40  ;;  %v2969_v40 = vld [vmem:[%s6009_s2 + $0x310] sm:$0xff]  ;;  %v2972_v41 = vld [vmem:[%s6009_s2 + $0x328] sm:$0xff] }
  0xed   :  { %382 = vmatmul.mubr.f32.gmra.mrb[2].mxu0 %v3351_v39 }
  0xee   :  { %3508 = vmatpush1.bf16.msra.mxu0 %v3507_v46  ;;  %387 = vmatprep.mubr.f32.mxu0 %v4103_v23  ;;  %v2937_v46 = vld [vmem:[%s6009_s2 + $0x230] sm:$0xff] }
  0xef   :  { %3510 = vmatprep.subr.bf16.mxu0 %v3509_v47  ;;  %v4517_v58 = vpop.f32.mrb[8].mxu1  ;;  %v3547_v51 = vpack.c.bf16 %v2937_v46, %v2935_v45 }
  0xf0   :  { %v4525_v61 = vpop.f32.mrb[9].mxu1 }
  0xf1   :  { %388 = vmatmul.mubr.f32.gmra.mrb[4].mxu0 %v269_v53  ;;  %v2939_v53 = vld [vmem:[%s6009_s2 + $0x240] sm:$0xff] }
  0xf2   :  { %3512 = vmatpush1.bf16.msra.mxu0 %v3511_v54  ;;  %393 = vmatprep.mubr.f32.mxu0 %v4103_v23  ;;  %v2941_v54 = vld [vmem:[%s6009_s2 + $0x250] sm:$0xff] }
  0xf3   :  { %3514 = vmatprep.subr.bf16.mxu0 %v3513_v55  ;;  %v4534_v2 = vpop.f32.mrb[10].mxu1  ;;  %v2944_v55 = vld [vmem:[%s6009_s2 + $0x268] sm:$0xff]  ;;  %v3551_v56 = vpack.c.bf16 %v2941_v54, %v2939_v53  ;;  %v2978_v53 = vld [vmem:[%s6009_s2 + $0x358] sm:$0xff]  ;;  %v3587_v54 = vpack.c.bf16 %v2973_v49, %v2971_v48  ;;  %v3007_v49 = vld [vmem:[%s6009_s2 + $0x420] sm:$0xff] }
  0xf4   :  { %v4542_v7 = vpop.f32.mrb[11].mxu1 }
  0xf5   :  { %394 = vmatmul.mubr.f32.gmra.mrb[6].mxu0 %v3354_v50 }
  0xf6   :  { %3516 = vmatpush1.bf16.msra.mxu0 %v3515_v62  ;;  %464 = vmatprep.mubr.f32.mxu0 %v4103_v23  ;;  %v2948_v62 = vld [vmem:[%s6009_s2 + $0x288] sm:$0xff] }
  0xf7   :  { %3518 = vmatprep.subr.bf16.mxu0 %v3517_v63  ;;  %v4551_v12 = vpop.f32.mrb[12].mxu1  ;;  %v3555_v63 = vpack.c.bf16 %v2945_v60, %v2943_v59 }
  0xf8   :  { %v4559_v15 = vpop.f32.mrb[13].mxu1 }
  0xfa   :  { %3520 = vmatpush1.bf16.msra.mxu0 %v3519_v8  ;;  %v3559_v8 = vpack.c.bf16 %v2949_v4, %v2947_v1  ;;  %v2983_v4 = vld [vmem:[%s6009_s2 + $0x380] sm:$0xff] }
  0xfb   :  { %3522 = vmatprep.subr.bf16.mxu0 %v3521_v9  ;;  %v4567_v20 = vpop.f32.mrb[14].mxu1 }
  0xfc   :  { %v4575_v24 = vpop.f32.mrb[15].mxu1 }
  0xfe   :  { %3524 = vmatpush1.bf16.msra.mxu0 %v3523_v16 }
  0xff   :  { %3526 = vmatprep.subr.bf16.mxu0 %v3525_v17  ;;  %v4583_v6 = vpop.f32.mrb[16].mxu1 }
 0x100   :  { %v4591_v33 = vpop.f32.mrb[17].mxu1 }
 0x102   :  { %3528 = vmatpush1.bf16.msra.mxu0 %v3527_v25  ;;  %v2962_v25 = vld [vmem:[%s6009_s2 + $0x2f8] sm:$0xff] }
 0x103   :  { %3530 = vmatprep.subr.bf16.mxu0 %v3529_v26  ;;  %v4599_v39 = vpop.f32.mrb[18].mxu1  ;;  %v3567_v26 = vpack.c.bf16 %v2957_v19, %v2955_v18  ;;  %v3569_v27 = vpack.c.bf16 %v2962_v25, %v2960_v22  ;;  %v2991_v18 = vld [vmem:[%s6009_s2 + $0x3c0] sm:$0xff]  ;;  %v2993_v19 = vld [vmem:[%s6009_s2 + $0x3d0] sm:$0xff]  ;;  %v2996_v25 = vld [vmem:[%s6009_s2 + $0x3e8] sm:$0xff] }
 0x104   :  { %v4607_v42 = vpop.f32.mrb[19].mxu1 }
 0x106   :  { %3532 = vmatpush1.bf16.msra.mxu0 %v3531_v34  ;;  %v2970_v34 = vld [vmem:[%s6009_s2 + $0x318] sm:$0xff] }
 0x107   :  { %3542 = vmatprep.subr.bf16.mxu0 %v3541_v36  ;;  %v4615_v47 = vpop.f32.mrb[20].mxu1  ;;  %v3571_v36 = vpack.c.bf16 %v2961_v28, %v2959_v3  ;;  %v3581_v37 = vpack.c.bf16 %v2970_v34, %v2968_v29  ;;  %v2995_v28 = vld [vmem:[%s6009_s2 + $0x3e0] sm:$0xff]  ;;  %v2997_v29 = vld [vmem:[%s6009_s2 + $0x3f0] sm:$0xff]  ;;  %v3004_v34 = vld [vmem:[%s6009_s2 + $0x408] sm:$0xff] }
 0x108   :  { %v4623_v50 = vpop.f32.mrb[21].mxu1 }
 0x109   :  { %465 = vmatmul.mubr.f32.vlgmr.msra.gmra.mrb[0].mxu0 %v4467_v31  ;;  %v2946_v31 = vld [vmem:[%s6009_s2 + $0x278] sm:$0xff] }
 0x10a   :  { %3544 = vmatpush1.bf16.msra.mxu0 %v3543_v43  ;;  %470 = vmatprep.mubr.f32.mxu0 %v4103_v23  ;;  %v3553_v57 = vpack.c.bf16 %v2946_v31, %v2944_v55  ;;  %v2974_v43 = vld [vmem:[%s6009_s2 + $0x338] sm:$0xff]  ;;  %v2975_v31 = vld [vmem:[%s6009_s2 + $0x340] sm:$0xff] }
 0x10b   :  { %3546 = vmatprep.subr.bf16.mxu0 %v3545_v44  ;;  %v4681_v16 = vpop.f32.mrb[22].mxu1  ;;  %v3583_v44 = vpack.c.bf16 %v2969_v40, %v2967_v38  ;;  %v3585_v46 = vpack.c.bf16 %v2974_v43, %v2972_v41  ;;  %v3003_v40 = vld [vmem:[%s6009_s2 + $0x400] sm:$0xff]  ;;  %v3005_v41 = vld [vmem:[%s6009_s2 + $0x410] sm:$0xff]  ;;  %v3008_v43 = vld [vmem:[%s6009_s2 + $0x428] sm:$0xff] }
 0x10c   :  { %v4689_v21 = vpop.f32.mrb[23].mxu1 }
 0x10d   :  { %471 = vmatmul.mubr.f32.gmra.mrb[2].mxu0 %v4465_v30  ;;  %v2950_v30 = vld [vmem:[%s6009_s2 + $0x298] sm:$0xff] }
 0x10e   :  { %3548 = vmatpush1.bf16.msra.mxu0 %v3547_v51  ;;  %476 = vmatprep.mubr.f32.mxu0 %v4103_v23  ;;  %v3557_v0 = vpack.c.bf16 %v2950_v30, %v2948_v62  ;;  %v2979_v62 = vld [vmem:[%s6009_s2 + $0x360] sm:$0xff]  ;;  %v2981_v30 = vld [vmem:[%s6009_s2 + $0x370] sm:$0xff] }
 0x10f   :  { %3550 = vmatprep.subr.bf16.mxu0 %v3549_v52  ;;  %v4721_v45 = vpop.f32.mrb[24].mxu1  ;;  %v2976_v52 = vld [vmem:[%s6009_s2 + $0x348] sm:$0xff] }
 0x110   :  { %v4729_v51 = vpop.f32.mrb[25].mxu1  ;;  %v3589_v55 = vpack.c.bf16 %v2978_v53, %v2976_v52  ;;  %v3009_v52 = vld [vmem:[%s6009_s2 + $0x430] sm:$0xff] }
 0x111   :  { %477 = vmatmul.mubr.f32.gmra.mrb[4].mxu0 %v4477_v35  ;;  %v2954_v35 = vld [vmem:[%s6009_s2 + $0x2b8] sm:$0xff] }
 0x112   :  { %3552 = vmatpush1.bf16.msra.mxu0 %v3551_v56  ;;  %482 = vmatprep.mubr.f32.mxu0 %v4103_v23  ;;  %v3561_v9 = vpack.c.bf16 %v2954_v35, %v2952_v5  ;;  %v2977_v56 = vld [vmem:[%s6009_s2 + $0x350] sm:$0xff]  ;;  %v2988_v35 = vld [vmem:[%s6009_s2 + $0x3a8] sm:$0xff] }
 0x113   :  { %3554 = vmatprep.subr.bf16.mxu0 %v3553_v57  ;;  %v2980_v57 = vld [vmem:[%s6009_s2 + $0x368] sm:$0xff]  ;;  %v3591_v59 = vpack.c.bf16 %v2977_v56, %v2975_v31  ;;  %v2985_v5 = vld [vmem:[%s6009_s2 + $0x390] sm:$0xff]  ;;  %v3627_v56 = vpack.c.bf16 %v3009_v52, %v3007_v49 }
 0x115   :  { %483 = vmatmul.mubr.f32.gmra.mrb[6].mxu0 %v4469_v32  ;;  %v2958_v32 = vld [vmem:[%s6009_s2 + $0x2d8] sm:$0xff] }
 0x116   :  { %3556 = vmatpush1.bf16.msra.mxu0 %v3555_v63  ;;  %687 = vmatprep.mubr.f32.mxu0 %v4103_v23  ;;  %v3565_v17 = vpack.c.bf16 %v2958_v32, %v2956_v13  ;;  %v2984_v63 = vld [vmem:[%s6009_s2 + $0x388] sm:$0xff]  ;;  %v3603_v32 = vpack.c.bf16 %v2989_v11, %v2987_v10  ;;  %v3023_v10 = vld [vmem:[%s6009_s2 + $0x4a0] sm:$0xff]  ;;  %v3025_v11 = vld [vmem:[%s6009_s2 + $0x4b0] sm:$0xff] }
 0x117   :  { %3558 = vmatprep.subr.bf16.mxu0 %v3557_v0  ;;  %v3595_v0 = vpack.c.bf16 %v2981_v30, %v2979_v62  ;;  %v2992_v13 = vld [vmem:[%s6009_s2 + $0x3c8] sm:$0xff] }
 0x11a   :  { %3560 = vmatpush1.bf16.msra.mxu0 %v3559_v8  ;;  %v3599_v8 = vpack.c.bf16 %v2985_v5, %v2983_v4  ;;  %v3019_v5 = vld [vmem:[%s6009_s2 + $0x480] sm:$0xff] }
 0x11b   :  { %3562 = vmatprep.subr.bf16.mxu0 %v3561_v9 }
 0x11e   :  { %3564 = vmatpush1.bf16.msra.mxu0 %v3563_v14  ;;  %v4793_v14 = vpop.f32.mrb[26].mxu1 }
 0x11f   :  { %3566 = vmatprep.subr.bf16.mxu0 %v3565_v17  ;;  %v4801_v22 = vpop.f32.mrb[27].mxu1 }
 0x120   :  { %v4839_v53 = vpop.f32.mrb[28].mxu1 }
 0x121   :  { %v4847_v31 = vpop.f32.mrb[29].mxu1 }
 0x122   :  { %3568 = vmatpush1.bf16.msra.mxu0 %v3567_v26  ;;  %v2998_v26 = vld [vmem:[%s6009_s2 + $0x3f8] sm:$0xff] }
 0x123   :  { %3570 = vmatprep.subr.bf16.mxu0 %v3569_v27  ;;  %v3607_v27 = vpack.c.bf16 %v2993_v19, %v2991_v18  ;;  %v3609_v3 = vpack.c.bf16 %v2998_v26, %v2996_v25  ;;  %v3027_v18 = vld [vmem:[%s6009_s2 + $0x4c0] sm:$0xff]  ;;  %v3029_v19 = vld [vmem:[%s6009_s2 + $0x4d0] sm:$0xff]  ;;  %v3032_v26 = vld [vmem:[%s6009_s2 + $0x4e8] sm:$0xff] }
 0x126   :  { %3572 = vmatpush1.bf16.msra.mxu0 %v3571_v36  ;;  %v3006_v36 = vld [vmem:[%s6009_s2 + $0x418] sm:$0xff] }
 0x127   :  { %3582 = vmatprep.subr.bf16.mxu0 %v3581_v37  ;;  %v3611_v37 = vpack.c.bf16 %v2997_v29, %v2995_v28  ;;  %v3621_v38 = vpack.c.bf16 %v3006_v36, %v3004_v34  ;;  %v3031_v29 = vld [vmem:[%s6009_s2 + $0x4e0] sm:$0xff]  ;;  %v3033_v34 = vld [vmem:[%s6009_s2 + $0x4f0] sm:$0xff]  ;;  %v3040_v36 = vld [vmem:[%s6009_s2 + $0x508] sm:$0xff] }
 0x129   :  { %688 = vmatmul.mubr.f32.vlgmr.msra.gmra.mrb[0].mxu0 %v4525_v61  ;;  %v2982_v61 = vld [vmem:[%s6009_s2 + $0x378] sm:$0xff] }
 0x12a   :  { %3584 = vmatpush1.bf16.msra.mxu0 %v3583_v44  ;;  %693 = vmatprep.mubr.f32.mxu0 %v4103_v23  ;;  %v3593_v60 = vpack.c.bf16 %v2982_v61, %v2980_v57  ;;  %v3010_v44 = vld [vmem:[%s6009_s2 + $0x438] sm:$0xff]  ;;  %v3011_v61 = vld [vmem:[%s6009_s2 + $0x440] sm:$0xff] }
 0x12b   :  { %3586 = vmatprep.subr.bf16.mxu0 %v3585_v46  ;;  %v3623_v46 = vpack.c.bf16 %v3005_v41, %v3003_v40  ;;  %v3625_v48 = vpack.c.bf16 %v3010_v44, %v3008_v43  ;;  %v3039_v41 = vld [vmem:[%s6009_s2 + $0x500] sm:$0xff]  ;;  %v3041_v43 = vld [vmem:[%s6009_s2 + $0x510] sm:$0xff]  ;;  %v3044_v44 = vld [vmem:[%s6009_s2 + $0x528] sm:$0xff] }
 0x12d   :  { %694 = vmatmul.mubr.f32.gmra.mrb[2].mxu0 %v4517_v58  ;;  %v2986_v58 = vld [vmem:[%s6009_s2 + $0x398] sm:$0xff] }
 0x12e   :  { %3588 = vmatpush1.bf16.msra.mxu0 %v3587_v54  ;;  %699 = vmatprep.mubr.f32.mxu0 %v4103_v23  ;;  %v3597_v1 = vpack.c.bf16 %v2986_v58, %v2984_v63  ;;  %v3012_v54 = vld [vmem:[%s6009_s2 + $0x448] sm:$0xff]  ;;  %v3015_v63 = vld [vmem:[%s6009_s2 + $0x460] sm:$0xff]  ;;  %v3017_v58 = vld [vmem:[%s6009_s2 + $0x470] sm:$0xff] }
 0x12f   :  { %3590 = vmatprep.subr.bf16.mxu0 %v3589_v55  ;;  %v3014_v55 = vld [vmem:[%s6009_s2 + $0x458] sm:$0xff] }
 0x130   :  { %v3629_v57 = vpack.c.bf16 %v3014_v55, %v3012_v54  ;;  %v3043_v54 = vld [vmem:[%s6009_s2 + $0x520] sm:$0xff]  ;;  %v3045_v55 = vld [vmem:[%s6009_s2 + $0x530] sm:$0xff] }
 0x131   :  { %700 = vmatmul.mubr.f32.gmra.mrb[4].mxu0 %v4542_v7  ;;  %v2990_v7 = vld [vmem:[%s6009_s2 + $0x3b8] sm:$0xff] }
 0x132   :  { %3592 = vmatpush1.bf16.msra.mxu0 %v3591_v59  ;;  %705 = vmatprep.mubr.f32.mxu0 %v4103_v23  ;;  %v3601_v9 = vpack.c.bf16 %v2990_v7, %v2988_v35  ;;  %v3013_v59 = vld [vmem:[%s6009_s2 + $0x450] sm:$0xff]  ;;  %v3024_v7 = vld [vmem:[%s6009_s2 + $0x4a8] sm:$0xff] }
 0x133   :  { %3594 = vmatprep.subr.bf16.mxu0 %v3593_v60  ;;  %v3016_v60 = vld [vmem:[%s6009_s2 + $0x468] sm:$0xff]  ;;  %v3631_v62 = vpack.c.bf16 %v3013_v59, %v3011_v61  ;;  %v3021_v35 = vld [vmem:[%s6009_s2 + $0x490] sm:$0xff]  ;;  %v3050_v61 = vld [vmem:[%s6009_s2 + $0x558] sm:$0xff]  ;;  %v3667_v59 = vpack.c.bf16 %v3045_v55, %v3043_v54 }
 0x134   :  { %v3079_v55 = vld [vmem:[%s6009_s2 + $0x620] sm:$0xff] }
 0x135   :  { %706 = vmatmul.mubr.f32.gmra.mrb[6].mxu0 %v4534_v2  ;;  %v2994_v2 = vld [vmem:[%s6009_s2 + $0x3d8] sm:$0xff] }
 0x136   :  { %3596 = vmatpush1.bf16.msra.mxu0 %v3595_v0  ;;  %918 = vmatprep.mubr.f32.mxu0 %v4103_v23  ;;  %v3605_v17 = vpack.c.bf16 %v2994_v2, %v2992_v13  ;;  %v3020_v0 = vld [vmem:[%s6009_s2 + $0x488] sm:$0xff]  ;;  %v3643_v2 = vpack.c.bf16 %v3025_v11, %v3023_v10 }
 0x137   :  { %3598 = vmatprep.subr.bf16.mxu0 %v3597_v1  ;;  %v3635_v1 = vpack.c.bf16 %v3017_v58, %v3015_v63  ;;  %v3028_v13 = vld [vmem:[%s6009_s2 + $0x4c8] sm:$0xff] }
 0x13a   :  { %3600 = vmatpush1.bf16.msra.mxu0 %v3599_v8  ;;  %v3639_v8 = vpack.c.bf16 %v3021_v35, %v3019_v5  ;;  %v3058_v5 = vld [vmem:[%s6009_s2 + $0x598] sm:$0xff] }
 0x13b   :  { %3602 = vmatprep.subr.bf16.mxu0 %v3601_v9 }
 0x13e   :  { %3604 = vmatpush1.bf16.msra.mxu0 %v3603_v32  ;;  %v4905_v32 = vpop.f32.mrb[30].mxu1 }
 0x13f   :  { %3606 = vmatprep.subr.bf16.mxu0 %v3605_v17  ;;  %v4913_v25 = vpop.f32.mrb[31].mxu1 }
 0x140   :  { %v4945_v49 = vpop.f32.mrb[32].mxu1 }
 0x142   :  { %3608 = vmatpush1.bf16.msra.mxu0 %v3607_v27  ;;  %v3034_v27 = vld [vmem:[%s6009_s2 + $0x4f8] sm:$0xff] }
 0x143   :  { %3610 = vmatprep.subr.bf16.mxu0 %v3609_v3  ;;  %v3647_v3 = vpack.c.bf16 %v3029_v19, %v3027_v18  ;;  %v3649_v28 = vpack.c.bf16 %v3034_v27, %v3032_v26  ;;  %v3063_v19 = vld [vmem:[%s6009_s2 + $0x5c0] sm:$0xff]  ;;  %v3065_v26 = vld [vmem:[%s6009_s2 + $0x5d0] sm:$0xff]  ;;  %v3068_v27 = vld [vmem:[%s6009_s2 + $0x5e8] sm:$0xff] }
 0x146   :  { %3612 = vmatpush1.bf16.msra.mxu0 %v3611_v37  ;;  %v3042_v37 = vld [vmem:[%s6009_s2 + $0x518] sm:$0xff] }
 0x147   :  { %3622 = vmatprep.subr.bf16.mxu0 %v3621_v38  ;;  %v3651_v38 = vpack.c.bf16 %v3033_v34, %v3031_v29  ;;  %v3661_v40 = vpack.c.bf16 %v3042_v37, %v3040_v36  ;;  %v3067_v34 = vld [vmem:[%s6009_s2 + $0x5e0] sm:$0xff]  ;;  %v3069_v36 = vld [vmem:[%s6009_s2 + $0x5f0] sm:$0xff]  ;;  %v3076_v37 = vld [vmem:[%s6009_s2 + $0x608] sm:$0xff] }
 0x149   :  { %919 = vmatmul.mubr.f32.vlgmr.msra.gmra.mrb[0].mxu0 %v4559_v15  ;;  %v3018_v15 = vld [vmem:[%s6009_s2 + $0x478] sm:$0xff] }
 0x14a   :  { %3624 = vmatpush1.bf16.msra.mxu0 %v3623_v46  ;;  %924 = vmatprep.mubr.f32.mxu0 %v4103_v23  ;;  %v3633_v30 = vpack.c.bf16 %v3018_v15, %v3016_v60  ;;  %v3046_v46 = vld [vmem:[%s6009_s2 + $0x538] sm:$0xff]  ;;  %v3047_v15 = vld [vmem:[%s6009_s2 + $0x540] sm:$0xff] }
 0x14b   :  { %3626 = vmatprep.subr.bf16.mxu0 %v3625_v48  ;;  %v3663_v48 = vpack.c.bf16 %v3041_v43, %v3039_v41  ;;  %v3665_v52 = vpack.c.bf16 %v3046_v46, %v3044_v44  ;;  %v3075_v43 = vld [vmem:[%s6009_s2 + $0x600] sm:$0xff]  ;;  %v3077_v44 = vld [vmem:[%s6009_s2 + $0x610] sm:$0xff]  ;;  %v3080_v46 = vld [vmem:[%s6009_s2 + $0x628] sm:$0xff] }
 0x14d   :  { %925 = vmatmul.mubr.f32.gmra.mrb[2].mxu0 %v4551_v12  ;;  %v3022_v12 = vld [vmem:[%s6009_s2 + $0x498] sm:$0xff] }
 0x14e   :  { %3628 = vmatpush1.bf16.msra.mxu0 %v3627_v56  ;;  %930 = vmatprep.mubr.f32.mxu0 %v4103_v23  ;;  %v3637_v4 = vpack.c.bf16 %v3022_v12, %v3020_v0  ;;  %v4953_v56 = vpop.f32.mrb[33].mxu1  ;;  %v3051_v12 = vld [vmem:[%s6009_s2 + $0x560] sm:$0xff] }
 0x14f   :  { %3630 = vmatprep.subr.bf16.mxu0 %v3629_v57  ;;  %v3048_v57 = vld [vmem:[%s6009_s2 + $0x548] sm:$0xff]  ;;  %v4977_v58 = vpop.f32.mrb[34].mxu1 }
 0x150   :  { %v3669_v60 = vpack.c.bf16 %v3050_v61, %v3048_v57  ;;  %v3081_v57 = vld [vmem:[%s6009_s2 + $0x630] sm:$0xff]  ;;  %v3084_v61 = vld [vmem:[%s6009_s2 + $0x648] sm:$0xff] }
 0x151   :  { %931 = vmatmul.mubr.f32.gmra.mrb[4].mxu0 %v4575_v24  ;;  %v3026_v24 = vld [vmem:[%s6009_s2 + $0x4b8] sm:$0xff] }
 0x152   :  { %3632 = vmatpush1.bf16.msra.mxu0 %v3631_v62  ;;  %936 = vmatprep.mubr.f32.mxu0 %v4103_v23  ;;  %v3641_v9 = vpack.c.bf16 %v3026_v24, %v3024_v7  ;;  %v3049_v62 = vld [vmem:[%s6009_s2 + $0x550] sm:$0xff]  ;;  %v3055_v24 = vld [vmem:[%s6009_s2 + $0x580] sm:$0xff] }
 0x153   :  { %3634 = vmatprep.subr.bf16.mxu0 %v3633_v30  ;;  %v3052_v30 = vld [vmem:[%s6009_s2 + $0x568] sm:$0xff]  ;;  %v3671_v63 = vpack.c.bf16 %v3049_v62, %v3047_v15  ;;  %v3083_v62 = vld [vmem:[%s6009_s2 + $0x640] sm:$0xff] }
 0x155   :  { %937 = vmatmul.mubr.f32.gmra.mrb[6].mxu0 %v4567_v20  ;;  %v3030_v20 = vld [vmem:[%s6009_s2 + $0x4d8] sm:$0xff] }
 0x156   :  { %3636 = vmatpush1.bf16.msra.mxu0 %v3635_v1  ;;  %1149 = vmatprep.mubr.f32.mxu0 %v4103_v23  ;;  %v3645_v17 = vpack.c.bf16 %v3030_v20, %v3028_v13  ;;  %v3053_v1 = vld [vmem:[%s6009_s2 + $0x570] sm:$0xff]  ;;  %v3059_v13 = vld [vmem:[%s6009_s2 + $0x5a0] sm:$0xff] }
 0x157   :  { %3638 = vmatprep.subr.bf16.mxu0 %v3637_v4  ;;  %v4985_v4 = vpop.f32.mrb[35].mxu1  ;;  %v3675_v35 = vpack.c.bf16 %v3053_v1, %v3051_v12  ;;  %v3061_v20 = vld [vmem:[%s6009_s2 + $0x5b0] sm:$0xff]  ;;  %v3087_v12 = vld [vmem:[%s6009_s2 + $0x660] sm:$0xff] }
 0x158   :  { %v3089_v1 = vld [vmem:[%s6009_s2 + $0x670] sm:$0xff] }
 0x15a   :  { %3640 = vmatpush1.bf16.msra.mxu0 %v3639_v8  ;;  %v3057_v8 = vld [vmem:[%s6009_s2 + $0x590] sm:$0xff] }
 0x15b   :  { %3642 = vmatprep.subr.bf16.mxu0 %v3641_v9  ;;  %v3060_v9 = vld [vmem:[%s6009_s2 + $0x5a8] sm:$0xff]  ;;  %v3679_v10 = vpack.c.bf16 %v3057_v8, %v3055_v24  ;;  %v3093_v24 = vld [vmem:[%s6009_s2 + $0x690] sm:$0xff] }
 0x15c   :  { %v3096_v8 = vld [vmem:[%s6009_s2 + $0x6a8] sm:$0xff] }
 0x15e   :  { %3644 = vmatpush1.bf16.msra.mxu0 %v3643_v2  ;;  %v3064_v2 = vld [vmem:[%s6009_s2 + $0x5c8] sm:$0xff] }
 0x15f   :  { %3646 = vmatprep.subr.bf16.mxu0 %v3645_v17  ;;  %v3683_v17 = vpack.c.bf16 %v3061_v20, %v3059_v13  ;;  %v3100_v13 = vld [vmem:[%s6009_s2 + $0x6c8] sm:$0xff] }
 0x162   :  { %3648 = vmatpush1.bf16.msra.mxu0 %v3647_v3  ;;  %v3070_v3 = vld [vmem:[%s6009_s2 + $0x5f8] sm:$0xff] }
 0x163   :  { %3650 = vmatprep.subr.bf16.mxu0 %v3649_v28  ;;  %v3687_v28 = vpack.c.bf16 %v3065_v26, %v3063_v19  ;;  %v3689_v29 = vpack.c.bf16 %v3070_v3, %v3068_v27  ;;  %v3106_v19 = vld [vmem:[%s6009_s2 + $0x6f8] sm:$0xff]  ;;  %v3103_v3 = vld [vmem:[%s6009_s2 + $0x6e0] sm:$0xff] }
 0x166   :  { %3652 = vmatpush1.bf16.msra.mxu0 %v3651_v38  ;;  %v3078_v38 = vld [vmem:[%s6009_s2 + $0x618] sm:$0xff] }
 0x167   :  { %3662 = vmatprep.subr.bf16.mxu0 %v3661_v40  ;;  %v3691_v40 = vpack.c.bf16 %v3069_v36, %v3067_v34  ;;  %v3701_v41 = vpack.c.bf16 %v3078_v38, %v3076_v37  ;;  %v3114_v34 = vld [vmem:[%s6009_s2 + $0x718] sm:$0xff]  ;;  %v3111_v38 = vld [vmem:[%s6009_s2 + $0x700] sm:$0xff] }
 0x169   :  { %1150 = vmatmul.mubr.f32.vlgmr.msra.gmra.mrb[0].mxu0 %v4591_v33  ;;  %v3054_v33 = vld [vmem:[%s6009_s2 + $0x578] sm:$0xff] }
 0x16a   :  { %3664 = vmatpush1.bf16.msra.mxu0 %v3663_v48  ;;  %1155 = vmatprep.mubr.f32.mxu0 %v4103_v23  ;;  %v3673_v0 = vpack.c.bf16 %v3054_v33, %v3052_v30  ;;  %v3082_v48 = vld [vmem:[%s6009_s2 + $0x638] sm:$0xff]  ;;  %v3085_v30 = vld [vmem:[%s6009_s2 + $0x650] sm:$0xff]  ;;  %v3088_v33 = vld [vmem:[%s6009_s2 + $0x668] sm:$0xff] }
 0x16b   :  { %3666 = vmatprep.subr.bf16.mxu0 %v3665_v52  ;;  %v3703_v52 = vpack.c.bf16 %v3077_v44, %v3075_v43  ;;  %v3705_v54 = vpack.c.bf16 %v3082_v48, %v3080_v46  ;;  %v3118_v43 = vld [vmem:[%s6009_s2 + $0x738] sm:$0xff]  ;;  %v3115_v48 = vld [vmem:[%s6009_s2 + $0x720] sm:$0xff] }
 0x16d   :  { %1156 = vmatmul.mubr.f32.gmra.mrb[2].mxu0 %v4583_v6  ;;  %v3056_v6 = vld [vmem:[%s6009_s2 + $0x588] sm:$0xff] }
 0x16e   :  { %3668 = vmatpush1.bf16.msra.mxu0 %v3667_v59  ;;  %1161 = vmatprep.mubr.f32.mxu0 %v4103_v23  ;;  %v3677_v7 = vpack.c.bf16 %v3058_v5, %v3056_v6  ;;  %v3086_v59 = vld [vmem:[%s6009_s2 + $0x658] sm:$0xff]  ;;  %v3092_v6 = vld [vmem:[%s6009_s2 + $0x688] sm:$0xff]  ;;  %v3715_v5 = vpack.c.bf16 %v3089_v1, %v3087_v12  ;;  %v3127_v1 = vld [vmem:[%s6009_s2 + $0x780] sm:$0xff] }
 0x16f   :  { %3670 = vmatprep.subr.bf16.mxu0 %v3669_v60  ;;  %v3707_v60 = vpack.c.bf16 %v3081_v57, %v3079_v55  ;;  %v3709_v15 = vpack.c.bf16 %v3086_v59, %v3084_v61  ;;  %v3122_v55 = vld [vmem:[%s6009_s2 + $0x758] sm:$0xff]  ;;  %v3119_v59 = vld [vmem:[%s6009_s2 + $0x740] sm:$0xff] }
 0x171   :  { %1162 = vmatmul.mubr.f32.gmra.mrb[4].mxu0 %v4607_v42  ;;  %v3062_v42 = vld [vmem:[%s6009_s2 + $0x5b8] sm:$0xff] }
 0x172   :  { %3672 = vmatpush1.bf16.msra.mxu0 %v3671_v63  ;;  %1167 = vmatprep.mubr.f32.mxu0 %v4103_v23  ;;  %v3681_v11 = vpack.c.bf16 %v3062_v42, %v3060_v9  ;;  %v3711_v63 = vpack.c.bf16 %v3085_v30, %v3083_v62 }
 0x173   :  { %3674 = vmatprep.subr.bf16.mxu0 %v3673_v0 }
 0x175   :  { %1168 = vmatmul.mubr.f32.gmra.mrb[6].mxu0 %v4599_v39  ;;  %v3066_v39 = vld [vmem:[%s6009_s2 + $0x5d8] sm:$0xff] }
 0x176   :  { %3676 = vmatpush1.bf16.msra.mxu0 %v3675_v35  ;;  %1380 = vmatprep.mubr.f32.mxu0 %v4103_v23  ;;  %v3685_v18 = vpack.c.bf16 %v3066_v39, %v3064_v2  ;;  %v3099_v39 = vld [vmem:[%s6009_s2 + $0x6c0] sm:$0xff] }
 0x177   :  { %3678 = vmatprep.subr.bf16.mxu0 %v3677_v7  ;;  %v3091_v7 = vld [vmem:[%s6009_s2 + $0x680] sm:$0xff] }
 0x178   :  { %v3719_v9 = vpack.c.bf16 %v3093_v24, %v3091_v7  ;;  %v3131_v7 = vld [vmem:[%s6009_s2 + $0x7a0] sm:$0xff]  ;;  %v3133_v24 = vld [vmem:[%s6009_s2 + $0x7b0] sm:$0xff] }
 0x17a   :  { %3680 = vmatpush1.bf16.msra.mxu0 %v3679_v10  ;;  %v3095_v10 = vld [vmem:[%s6009_s2 + $0x6a0] sm:$0xff] }
 0x17b   :  { %3682 = vmatprep.subr.bf16.mxu0 %v3681_v11  ;;  %v3097_v11 = vld [vmem:[%s6009_s2 + $0x6b0] sm:$0xff] }
 0x17c   :  { %v3723_v20 = vpack.c.bf16 %v3097_v11, %v3095_v10  ;;  %v3137_v10 = vld [vmem:[%s6009_s2 + $0x7d0] sm:$0xff]  ;;  %v3140_v11 = vld [vmem:[%s6009_s2 + $0x7e8] sm:$0xff] }
 0x17e   :  { %3684 = vmatpush1.bf16.msra.mxu0 %v3683_v17  ;;  %v3101_v17 = vld [vmem:[%s6009_s2 + $0x6d0] sm:$0xff] }
 0x17f   :  { %3686 = vmatprep.subr.bf16.mxu0 %v3685_v18  ;;  %v3104_v18 = vld [vmem:[%s6009_s2 + $0x6e8] sm:$0xff]  ;;  %v3727_v26 = vpack.c.bf16 %v3101_v17, %v3099_v39  ;;  %v3141_v39 = vld [vmem:[%s6009_s2 + $0x7f0] sm:$0xff] }
 0x180   :  { %v3729_v27 = vpack.c.bf16 %v3106_v19, %v3104_v18  ;;  %v3148_v17 = vld [vmem:[%s6009_s2 + $0x808] sm:$0xff]  ;;  %v3150_v18 = vld [vmem:[%s6009_s2 + $0x818] sm:$0xff] }
 0x182   :  { %3688 = vmatpush1.bf16.msra.mxu0 %v3687_v28  ;;  %v3105_v28 = vld [vmem:[%s6009_s2 + $0x6f0] sm:$0xff] }
 0x183   :  { %3690 = vmatprep.subr.bf16.mxu0 %v3689_v29  ;;  %v3112_v29 = vld [vmem:[%s6009_s2 + $0x708] sm:$0xff]  ;;  %v3731_v36 = vpack.c.bf16 %v3105_v28, %v3103_v3  ;;  %v3149_v3 = vld [vmem:[%s6009_s2 + $0x810] sm:$0xff] }
 0x184   :  { %v3741_v37 = vpack.c.bf16 %v3114_v34, %v3112_v29  ;;  %v3152_v28 = vld [vmem:[%s6009_s2 + $0x828] sm:$0xff]  ;;  %v3154_v29 = vld [vmem:[%s6009_s2 + $0x838] sm:$0xff] }
 0x186   :  { %3692 = vmatpush1.bf16.msra.mxu0 %v3691_v40  ;;  %v3113_v40 = vld [vmem:[%s6009_s2 + $0x710] sm:$0xff] }
 0x187   :  { %3702 = vmatprep.subr.bf16.mxu0 %v3701_v41  ;;  %v3116_v41 = vld [vmem:[%s6009_s2 + $0x728] sm:$0xff]  ;;  %v3743_v44 = vpack.c.bf16 %v3113_v40, %v3111_v38  ;;  %v3153_v38 = vld [vmem:[%s6009_s2 + $0x830] sm:$0xff] }
 0x188   :  { %v3745_v46 = vpack.c.bf16 %v3118_v43, %v3116_v41  ;;  %v3156_v40 = vld [vmem:[%s6009_s2 + $0x848] sm:$0xff]  ;;  %v3158_v41 = vld [vmem:[%s6009_s2 + $0x858] sm:$0xff] }
 0x189   :  { %1381 = vmatmul.mubr.f32.vlgmr.msra.gmra.mrb[0].mxu0 %v4623_v50  ;;  %v3090_v50 = vld [vmem:[%s6009_s2 + $0x678] sm:$0xff] }
 0x18a   :  { %3704 = vmatpush1.bf16.msra.mxu0 %v3703_v52  ;;  %1386 = vmatprep.mubr.f32.mxu0 %v4103_v23  ;;  %v3713_v0 = vpack.c.bf16 %v3090_v50, %v3088_v33  ;;  %v3117_v52 = vld [vmem:[%s6009_s2 + $0x730] sm:$0xff]  ;;  %v3123_v33 = vld [vmem:[%s6009_s2 + $0x760] sm:$0xff] }
 0x18b   :  { %3706 = vmatprep.subr.bf16.mxu0 %v3705_v54  ;;  %v3120_v54 = vld [vmem:[%s6009_s2 + $0x748] sm:$0xff]  ;;  %v3747_v57 = vpack.c.bf16 %v3117_v52, %v3115_v48  ;;  %v3125_v50 = vld [vmem:[%s6009_s2 + $0x770] sm:$0xff] }
 0x18c   :  { %v3749_v61 = vpack.c.bf16 %v3122_v55, %v3120_v54  ;;  %v3157_v48 = vld [vmem:[%s6009_s2 + $0x850] sm:$0xff]  ;;  %v3160_v52 = vld [vmem:[%s6009_s2 + $0x868] sm:$0xff] }
 0x18d   :  { %1387 = vmatmul.mubr.f32.gmra.mrb[2].mxu0 %v4615_v47  ;;  %v3094_v47 = vld [vmem:[%s6009_s2 + $0x698] sm:$0xff] }
 0x18e   :  { %3708 = vmatpush1.bf16.msra.mxu0 %v3707_v60  ;;  %1392 = vmatprep.mubr.f32.mxu0 %v4103_v23  ;;  %v3717_v35 = vpack.c.bf16 %v3094_v47, %v3092_v6  ;;  %v3121_v60 = vld [vmem:[%s6009_s2 + $0x750] sm:$0xff]  ;;  %v3132_v47 = vld [vmem:[%s6009_s2 + $0x7a8] sm:$0xff] }
 0x18f   :  { %3710 = vmatprep.subr.bf16.mxu0 %v3709_v15  ;;  %v3124_v15 = vld [vmem:[%s6009_s2 + $0x768] sm:$0xff]  ;;  %v3751_v62 = vpack.c.bf16 %v3121_v60, %v3119_v59  ;;  %v3129_v6 = vld [vmem:[%s6009_s2 + $0x790] sm:$0xff] }
 0x190   :  { %v3164_v59 = vld [vmem:[%s6009_s2 + $0x888] sm:$0xff] }
 0x191   :  { %1393 = vmatmul.mubr.f32.gmra.mrb[4].mxu0 %v4689_v21  ;;  %v3098_v21 = vld [vmem:[%s6009_s2 + $0x6b8] sm:$0xff] }
 0x192   :  { %3712 = vmatpush1.bf16.msra.mxu0 %v3711_v63  ;;  %1398 = vmatprep.mubr.f32.mxu0 %v4103_v23  ;;  %v3721_v42 = vpack.c.bf16 %v3098_v21, %v3096_v8  ;;  %v3128_v63 = vld [vmem:[%s6009_s2 + $0x788] sm:$0xff]  ;;  %v3763_v21 = vpack.c.bf16 %v3133_v24, %v3131_v7  ;;  %v3175_v24 = vld [vmem:[%s6009_s2 + $0x8e0] sm:$0xff] }
 0x193   :  { %3714 = vmatprep.subr.bf16.mxu0 %v3713_v0  ;;  %v3755_v0 = vpack.c.bf16 %v3125_v50, %v3123_v33  ;;  %v3136_v8 = vld [vmem:[%s6009_s2 + $0x7c8] sm:$0xff] }
 0x195   :  { %1399 = vmatmul.mubr.f32.gmra.mrb[6].mxu0 %v4681_v16  ;;  %v3102_v16 = vld [vmem:[%s6009_s2 + $0x6d8] sm:$0xff] }
 0x196   :  { %3716 = vmatpush1.bf16.msra.mxu0 %v3715_v5  ;;  %1611 = vmatprep.mubr.f32.mxu0 %v4103_v23  ;;  %v3725_v2 = vpack.c.bf16 %v3102_v16, %v3100_v13  ;;  %v3759_v5 = vpack.c.bf16 %v3129_v6, %v3127_v1  ;;  %v3142_v13 = vld [vmem:[%s6009_s2 + $0x7f8] sm:$0xff]  ;;  %v3171_v6 = vld [vmem:[%s6009_s2 + $0x8c0] sm:$0xff] }
 0x197   :  { %3718 = vmatprep.subr.bf16.mxu0 %v3717_v35 }
 0x19a   :  { %3720 = vmatpush1.bf16.msra.mxu0 %v3719_v9 }
 0x19b   :  { %3722 = vmatprep.subr.bf16.mxu0 %v3721_v42  ;;  %v3135_v42 = vld [vmem:[%s6009_s2 + $0x7c0] sm:$0xff] }
 0x19c   :  { %v3767_v16 = vpack.c.bf16 %v3137_v10, %v3135_v42 }
 0x19e   :  { %3724 = vmatpush1.bf16.msra.mxu0 %v3723_v20  ;;  %v3769_v20 = vpack.c.bf16 %v3142_v13, %v3140_v11 }
 0x19f   :  { %3726 = vmatprep.subr.bf16.mxu0 %v3725_v2  ;;  %v3139_v2 = vld [vmem:[%s6009_s2 + $0x7e0] sm:$0xff] }
 0x1a0   :  { %v3771_v19 = vpack.c.bf16 %v3141_v39, %v3139_v2 }
 0x1a2   :  { %3728 = vmatpush1.bf16.msra.mxu0 %v3727_v26  ;;  %v3781_v26 = vpack.c.bf16 %v3150_v18, %v3148_v17 }
 0x1a3   :  { %3730 = vmatprep.subr.bf16.mxu0 %v3729_v27  ;;  %v3147_v27 = vld [vmem:[%s6009_s2 + $0x800] sm:$0xff] }
 0x1a4   :  { %v3783_v34 = vpack.c.bf16 %v3149_v3, %v3147_v27 }
 0x1a6   :  { %3732 = vmatpush1.bf16.msra.mxu0 %v3731_v36  ;;  %v3785_v36 = vpack.c.bf16 %v3154_v29, %v3152_v28 }
 0x1a7   :  { %3742 = vmatprep.subr.bf16.mxu0 %v3741_v37  ;;  %v3151_v37 = vld [vmem:[%s6009_s2 + $0x820] sm:$0xff] }
 0x1a8   :  { %v3787_v43 = vpack.c.bf16 %v3153_v38, %v3151_v37 }
 0x1a9   :  { %1612 = vmatmul.mubr.f32.vlgmr.msra.gmra.mrb[0].mxu0 %v4729_v51  ;;  %v3126_v51 = vld [vmem:[%s6009_s2 + $0x778] sm:$0xff] }
 0x1aa   :  { %3744 = vmatpush1.bf16.msra.mxu0 %v3743_v44  ;;  %1617 = vmatprep.mubr.f32.mxu0 %v4103_v23  ;;  %v3753_v30 = vpack.c.bf16 %v3126_v51, %v3124_v15  ;;  %v3789_v44 = vpack.c.bf16 %v3158_v41, %v3156_v40  ;;  %v3163_v51 = vld [vmem:[%s6009_s2 + $0x880] sm:$0xff] }
 0x1ab   :  { %3746 = vmatprep.subr.bf16.mxu0 %v3745_v46  ;;  %v3155_v46 = vld [vmem:[%s6009_s2 + $0x840] sm:$0xff] }
 0x1ac   :  { %v3791_v54 = vpack.c.bf16 %v3157_v48, %v3155_v46 }
 0x1ad   :  { %1618 = vmatmul.mubr.f32.gmra.mrb[2].mxu0 %v4721_v45  ;;  %v3130_v45 = vld [vmem:[%s6009_s2 + $0x798] sm:$0xff] }
 0x1ae   :  { %3748 = vmatpush1.bf16.msra.mxu0 %v3747_v57  ;;  %1623 = vmatprep.mubr.f32.mxu0 %v4103_v23  ;;  %v3757_v12 = vpack.c.bf16 %v3130_v45, %v3128_v63  ;;  %v3159_v57 = vld [vmem:[%s6009_s2 + $0x860] sm:$0xff]  ;;  %v3169_v45 = vld [vmem:[%s6009_s2 + $0x8b0] sm:$0xff] }
 0x1af   :  { %3750 = vmatprep.subr.bf16.mxu0 %v3749_v61  ;;  %v3161_v61 = vld [vmem:[%s6009_s2 + $0x870] sm:$0xff]  ;;  %v3167_v63 = vld [vmem:[%s6009_s2 + $0x8a0] sm:$0xff] }
 0x1b0   :  { %v3795_v60 = vpack.c.bf16 %v3161_v61, %v3159_v57 }
 0x1b1   :  { %1624 = vmatmul.mubr.f32.gmra.mrb[4].mxu0 %v4801_v22  ;;  %v3134_v22 = vld [vmem:[%s6009_s2 + $0x7b8] sm:$0xff] }
 0x1b2   :  { %3752 = vmatpush1.bf16.msra.mxu0 %v3751_v62  ;;  %1629 = vmatprep.mubr.f32.mxu0 %v4103_v23  ;;  %v3761_v35 = vpack.c.bf16 %v3134_v22, %v3132_v47  ;;  %v3165_v62 = vld [vmem:[%s6009_s2 + $0x890] sm:$0xff]  ;;  %v3176_v22 = vld [vmem:[%s6009_s2 + $0x8e8] sm:$0xff] }
 0x1b3   :  { %3754 = vmatprep.subr.bf16.mxu0 %v3753_v30  ;;  %v3168_v30 = vld [vmem:[%s6009_s2 + $0x8a8] sm:$0xff]  ;;  %v3799_v33 = vpack.c.bf16 %v3165_v62, %v3163_v51  ;;  %v3173_v47 = vld [vmem:[%s6009_s2 + $0x8d0] sm:$0xff] }
 0x1b5   :  { %1630 = vmatmul.mubr.f32.gmra.mrb[6].mxu0 %v4793_v14  ;;  %v3138_v14 = vld [vmem:[%s6009_s2 + $0x7d8] sm:$0xff] }
 0x1b6   :  { %3756 = vmatpush1.bf16.msra.mxu0 %v3755_v0  ;;  %1842 = vmatprep.mubr.f32.mxu0 %v4103_v23  ;;  %v3765_v9 = vpack.c.bf16 %v3138_v14, %v3136_v8  ;;  %v3172_v0 = vld [vmem:[%s6009_s2 + $0x8c8] sm:$0xff]  ;;  %v3177_v8 = vld [vmem:[%s6009_s2 + $0x8f0] sm:$0xff] }
 0x1b7   :  { %3758 = vmatprep.subr.bf16.mxu0 %v3757_v12  ;;  %v3803_v12 = vpack.c.bf16 %v3169_v45, %v3167_v63  ;;  %v3811_v14 = vpack.c.bf16 %v3177_v8, %v3175_v24 }
 0x1ba   :  { %3760 = vmatpush1.bf16.msra.mxu0 %v3759_v5  ;;  %v3178_v5 = vld [vmem:[%s6009_s2 + $0x8f8] sm:$0xff] }
 0x1bb   :  { %3762 = vmatprep.subr.bf16.mxu0 %v3761_v35  ;;  %v3807_v35 = vpack.c.bf16 %v3173_v47, %v3171_v6  ;;  %v3809_v7 = vpack.c.bf16 %v3178_v5, %v3176_v22  ;;  %v2170_v6 = vld [vmem:[%s6012_s5] sm:$0xff]  ;;  %v2171_v47 = vld [vmem:[%s6012_s5 + $0x8] sm:$0xff]  ;;  %v2172_v22 = vld [vmem:[%s6012_s5 + $0x10] sm:$0xff] }
 0x1bc   :  { %v2173_v5 = vld [vmem:[%s6012_s5 + $0x18] sm:$0xff] }
 0x1be   :  { %3764 = vmatpush1.bf16.msra.mxu0 %v3763_v21  ;;  %v2108_v21 = vlaneseq }
 0x1bf   :  { %3766 = vmatprep.subr.bf16.mxu0 %v3765_v9 }
 0x1c0   :  { %v5358_v9 = vshrl.u32 %v2108_v21, 7 }
 0x1c2   :  { %3768 = vmatpush1.bf16.msra.mxu0 %v3767_v16  ;;  %v5361_v42 = vsub.s32 0, %v5358_v9 }
 0x1c3   :  { %3770 = vmatprep.subr.bf16.mxu0 %v3769_v20 }
 0x1c6   :  { %3772 = vmatpush1.bf16.msra.mxu0 %v3771_v19 }
 0x1c7   :  { %3782 = vmatprep.subr.bf16.mxu0 %v3781_v26 }
 0x1c9   :  { %1843 = vmatmul.mubr.f32.vlgmr.msra.gmra.mrb[0].mxu0 %v4847_v31  ;;  %v3162_v31 = vld [vmem:[%s6009_s2 + $0x878] sm:$0xff] }
 0x1ca   :  { %3784 = vmatpush1.bf16.msra.mxu0 %v3783_v34  ;;  %1848 = vmatprep.mubr.f32.mxu0 %v4103_v23  ;;  %v3793_v55 = vpack.c.bf16 %v3162_v31, %v3160_v52 }
 0x1cb   :  { %3786 = vmatprep.subr.bf16.mxu0 %v3785_v36 }
 0x1cd   :  { %1849 = vmatmul.mubr.f32.gmra.mrb[2].mxu0 %v4839_v53  ;;  %v3166_v53 = vld [vmem:[%s6009_s2 + $0x898] sm:$0xff] }
 0x1ce   :  { %3788 = vmatpush1.bf16.msra.mxu0 %v3787_v43  ;;  %1854 = vmatprep.mubr.f32.mxu0 %v4103_v23  ;;  %v3797_v15 = vpack.c.bf16 %v3166_v53, %v3164_v59 }
 0x1cf   :  { %3790 = vmatprep.subr.bf16.mxu0 %v3789_v44 }
 0x1d1   :  { %1855 = vmatmul.mubr.f32.gmra.mrb[4].mxu0 %v4913_v25  ;;  %v3170_v25 = vld [vmem:[%s6009_s2 + $0x8b8] sm:$0xff] }
 0x1d2   :  { %3792 = vmatpush1.bf16.msra.mxu0 %v3791_v54  ;;  %1860 = vmatprep.mubr.f32.mxu0 %v4103_v23  ;;  %v3801_v50 = vpack.c.bf16 %v3170_v25, %v3168_v30 }
 0x1d3   :  { %3794 = vmatprep.subr.bf16.mxu0 %v3793_v55 }
 0x1d5   :  { %1861 = vmatmul.mubr.f32.gmra.mrb[6].mxu0 %v4905_v32  ;;  %v3174_v32 = vld [vmem:[%s6009_s2 + $0x8d8] sm:$0xff] }
 0x1d6   :  { %3796 = vmatpush1.bf16.msra.mxu0 %v3795_v60  ;;  %2073 = vmatprep.mubr.f32.mxu0 %v4103_v23  ;;  %v3805_v1 = vpack.c.bf16 %v3174_v32, %v3172_v0 }
 0x1d7   :  { %3798 = vmatprep.subr.bf16.mxu0 %v3797_v15 }
 0x1da   :  { %3800 = vmatpush1.bf16.msra.mxu0 %v3799_v33 }
 0x1db   :  { %3802 = vmatprep.subr.bf16.mxu0 %v3801_v50 }
 0x1de   :  { %3804 = vmatpush1.bf16.msra.mxu0 %v3803_v12 }
 0x1df   :  { %3806 = vmatprep.subr.bf16.mxu0 %v3805_v1 }
 0x1e2   :  { %3808 = vmatpush1.bf16.msra.mxu0 %v3807_v35 }
 0x1e3   :  { %3810 = vmatprep.subr.bf16.mxu0 %v3809_v7 }
 0x1e6   :  { %3812 = vmatpush1.bf16.msra.mxu0 %v3811_v14 }
 0x1e9   :  { %2074 = vmatmul.mubr.f32.vlgmr.msra.gmra.mrb[0].mxu0 %v4953_v56  ;;  %v2106_v56 = vld [vmem:[%s6010_s3] sm:$0x3]  ;;  %s4104_s3 = smov [#allocation2]  }
 0x1ea   :  { %2079 = vmatprep.mubr.f32.mxu0 %v4103_v23  ;;  %v2111_v10 = vrot.slane %v2106_v56, %v5361_v42 }
 0x1ed   :  { %2080 = vmatmul.mubr.f32.gmra.mrb[2].mxu0 %v4945_v49  ;;  %v5367_v49 = vsub.s32 1, %v5358_v9 }
 0x1ee   :  { %2085 = vmatprep.mubr.f32.mxu0 %v4103_v23 }
 0x1f1   :  { %2086 = vmatmul.mubr.f32.gmra.mrb[4].mxu0 %v4985_v4  ;;  %v2126_v4 = vld [vmem:[%s6011_s4] sm:$0x3]  ;;  %s2879_s4 = sshll.u32 %s4104_s3, 4  ;;  %s2880_s4 = int_to_ptr.vmem [resolvable:$true] %s2879_s4 }
 0x1f2   :  { %2091 = vmatprep.mubr.f32.mxu0 %v4103_v23  ;;  %v2131_v11 = vrot.slane %v2126_v4, %v5361_v42  ;;  %v2135_v16 = vrot.slane %v2126_v4, %v5367_v49  ;;  %s4079_s30 = scalar_lea.vmem %s2880_s4, 32  ;;  %p4084_p1 = scmp.lt.s32.totalorder %s2880_s4, %s2880_s4 }
 0x1f3   :  { %p4080_p0 = scmp.ne.s32.totalorder %s2880_s4, %s4079_s30  ;;  %p4085_p2 = scmp.lt.s32.totalorder %s4079_s30, %s4079_s30 }
 0x1f5   :  { %2092 = vmatmul.mubr.f32.gmra.mrb[6].mxu0 %v4977_v58  ;;  %v2115_v58 = vrot.slane %v2106_v56, %v5367_v49  ;;  %p4086_p3 = por %p4085_p2, %p4084_p1 }
 0x1f7   :  { %p4087_p4 = pnand %p4086_p3, %p4080_p0 }
 0x2bc   :  { %v2075_v13 = vpop.f32.mrb[0].mxu0 }
 0x2bd   :  { %v2118_v20 = vmul.f32 %v2111_v10, %v2075_v13  ;;  %v2077_v2 = vpop.f32.mrb[1].mxu0  ;;  %v2358_v13 = vld [vmem:[%s6014_s7 + $0x8] sm:$0xff] }
 0x2be   :  { %v2119_v39 = vmul.f32 %v2115_v58, %v2077_v2  ;;  %v2361_v2 = vld [vmem:[%s6014_s7 + $0x20] sm:$0xff] }
 0x2bf   :  { %v2138_v17 = vadd.f32 %v2131_v11, %v2118_v20  ;;  %v2357_v20 = vld [vmem:[%s6014_s7] sm:$0xff] }
 0x2c0   :  { %v2139_v18 = vadd.f32 %v2135_v16, %v2119_v39  ;;  %v2081_v19 = vpop.f32.mrb[2].mxu0 }
 0x2c1   :  { %v2120_v26 = vmul.f32 %v2111_v10, %v2081_v19  ;;  %v2083_v27 = vpop.f32.mrb[3].mxu0  ;;  %v2154_v28 = vmul.f32 0.1, %v2138_v17  ;;  %vm2146_vm1 = vcmp.gt.f32.partialorder %v2138_v17, 0.0 }
 0x2c2   :  { %v2121_v3 = vmul.f32 %v2115_v58, %v2083_v27  ;;  %v2155_v34 = vmul.f32 0.1, %v2139_v18  ;;  %vm2147_vm2 = vcmp.gt.f32.partialorder %v2139_v18, 0.0  ;;  %v2281_v27 = vld [vmem:[%s6013_s6] sm:$0x3] }
 0x2c3   :  { %v2140_v29 = vadd.f32 %v2131_v11, %v2120_v26  ;;  %v2162_v46 = vsel %vm2146_vm1, %v2138_v17, %v2154_v28  ;;  %v2366_v17 = vld [vmem:[%s6014_s7 + $0x48] sm:$0xff] }
 0x2c4   :  { %v2141_v36 = vadd.f32 %v2135_v16, %v2121_v3  ;;  %v2087_v37 = vpop.f32.mrb[4].mxu0  ;;  %v2163_v55 = vsel %vm2147_vm2, %v2139_v18, %v2155_v34  ;;  %v2370_v18 = vld [vmem:[%s6014_s7 + $0x68] sm:$0xff]  ;;  %v3823_v3 = vpack.c.bf16 %v2361_v2, %v2357_v20  ;;  %v2369_v34 = vld [vmem:[%s6014_s7 + $0x60] sm:$0xff] }
 0x2c5   :  { %vm2148_vm3 = vcmp.gt.f32.partialorder %v2140_v29, 0.0  ;;  %v2156_v38 = vmul.f32 0.1, %v2140_v29  ;;  %v2122_v40 = vmul.f32 %v2111_v10, %v2087_v37  ;;  %v2089_v41 = vpop.f32.mrb[5].mxu0  ;;  %v3825_v28 = vpack.c.bf16 %v2370_v18, %v2366_v17  ;;  %v2378_v37 = vld [vmem:[%s6014_s7 + $0xa8] sm:$0xff]  ;;  %v2437_v17 = vld [vmem:[%s6014_s7 + $0x280] sm:$0xff] }
 0x2c6   :  { %vm2149_vm4 = vcmp.gt.f32.partialorder %v2141_v36, 0.0  ;;  %v2157_v43 = vmul.f32 0.1, %v2141_v36  ;;  %v2123_v44 = vmul.f32 %v2115_v58, %v2089_v41  ;;  %v2373_v41 = vld [vmem:[%s6014_s7 + $0x80] sm:$0xff]  ;;  %v2442_v20 = vld [vmem:[%s6014_s7 + $0x2a8] sm:$0xff] }
 0x2c7   :  { %v2164_v48 = vsel %vm2148_vm3, %v2140_v29, %v2156_v38  ;;  %v2142_v52 = vadd.f32 %v2131_v11, %v2122_v40  ;;  %v2365_v29 = vld [vmem:[%s6014_s7 + $0x40] sm:$0xff] }
 0x2c8   :  { %v2143_v31 = vadd.f32 %v2135_v16, %v2123_v44  ;;  %v2093_v54 = vpop.f32.mrb[6].mxu0  ;;  %v2165_v57 = vsel %vm2149_vm4, %v2141_v36, %v2157_v43  ;;  %v3815_v61 = vpack.c.bf16 %v2164_v48, %v2162_v46  ;;  %v2374_v36 = vld [vmem:[%s6014_s7 + $0x88] sm:$0xff]  ;;  %v3827_v38 = vpack.c.bf16 %v2369_v34, %v2365_v29  ;;  %v2377_v43 = vld [vmem:[%s6014_s7 + $0xa0] sm:$0xff] }
 0x2c9   :  { %v2124_v59 = vmul.f32 %v2111_v10, %v2093_v54  ;;  %v2095_v53 = vpop.f32.mrb[7].mxu0  ;;  %v3813_v60 = vpack.c.bf16 %v2165_v57, %v2163_v55  ;;  %v2158_v51 = vmul.f32 0.1, %v2142_v52  ;;  %vm2150_vm5 = vcmp.gt.f32.partialorder %v2142_v52, 0.0  ;;  %v2382_v44 = vld [vmem:[%s6014_s7 + $0xc8] sm:$0xff]  ;;  %v2385_v54 = vld [vmem:[%s6014_s7 + $0xe0] sm:$0xff] }
 0x2ca   :  { %v2125_v15 = vmul.f32 %v2115_v58, %v2095_v53  ;;  %v2159_v30 = vmul.f32 0.1, %v2143_v31  ;;  %vm2151_vm6 = vcmp.gt.f32.partialorder %v2143_v31, 0.0  ;;  %v3829_v40 = vpack.c.bf16 %v2378_v37, %v2374_v36  ;;  %v2386_v46 = vld [vmem:[%s6014_s7 + $0xe8] sm:$0xff]  ;;  %v2389_v53 = vld [vmem:[%s6014_s7 + $0x100] sm:$0xff] }
 0x2cb   :  { %v2144_v62 = vadd.f32 %v2131_v11, %v2124_v59  ;;  %3814 = vmatprep.subr.bf16.mxu1 %v3813_v60  ;;  %v2166_v63 = vsel %vm2150_vm5, %v2142_v52, %v2158_v51  ;;  %v3831_v48 = vpack.c.bf16 %v2377_v43, %v2373_v41  ;;  %v3833_v52 = vpack.c.bf16 %v2386_v46, %v2382_v44  ;;  %v2390_v55 = vld [vmem:[%s6014_s7 + $0x108] sm:$0xff]  ;;  %v2393_v60 = vld [vmem:[%s6014_s7 + $0x120] sm:$0xff] }
 0x2cc   :  { %v2145_v25 = vadd.f32 %v2135_v16, %v2125_v15  ;;  %3816 = vmatpush1.bf16.msra.mxu1 %v3815_v61  ;;  %v2167_v0 = vsel %vm2151_vm6, %v2143_v31, %v2159_v30  ;;  %v2362_v16 = vld [vmem:[%s6014_s7 + $0x28] sm:$0xff]  ;;  %v2381_v31 = vld [vmem:[%s6014_s7 + $0xc0] sm:$0xff] }
 0x2cd   :  { %vm2152_vm7 = vcmp.gt.f32.partialorder %v2144_v62, 0.0  ;;  %v2160_v33 = vmul.f32 0.1, %v2144_v62  ;;  %v3821_v26 = vpack.c.bf16 %v2362_v16, %v2358_v13  ;;  %v2394_v57 = vld [vmem:[%s6014_s7 + $0x128] sm:$0xff]  ;;  %v3835_v61 = vpack.c.bf16 %v2385_v54, %v2381_v31  ;;  %v2429_v13 = vld [vmem:[%s6014_s7 + $0x240] sm:$0xff] }
 0x2ce   :  { %vm2153_vm8 = vcmp.gt.f32.partialorder %v2145_v25, 0.0  ;;  %v2161_v50 = vmul.f32 0.1, %v2145_v25  ;;  %v3837_v59 = vpack.c.bf16 %v2394_v57, %v2390_v55  ;;  %v2398_v15 = vld [vmem:[%s6014_s7 + $0x148] sm:$0xff]  ;;  %v2433_v16 = vld [vmem:[%s6014_s7 + $0x260] sm:$0xff] }
 0x2cf   :  { %v2168_v45 = vsel %vm2152_vm7, %v2144_v62, %v2160_v33  ;;  %v2402_v51 = vld [vmem:[%s6014_s7 + $0x168] sm:$0xff]  ;;  %v3839_v62 = vpack.c.bf16 %v2393_v60, %v2389_v53  ;;  %v2401_v33 = vld [vmem:[%s6014_s7 + $0x160] sm:$0xff]  ;;  %v3859_v2 = vpack.c.bf16 %v2433_v16, %v2429_v13  ;;  %v2383_v16 = vld [vmem:[%s6014_s7 + $0xd0] sm:$0xff] }
 0x2d0   :  { %v2169_v32 = vsel %vm2153_vm8, %v2145_v25, %v2161_v50  ;;  %v3819_v12 = vpack.c.bf16 %v2168_v45, %v2166_v63  ;;  %v3841_v30 = vpack.c.bf16 %v2402_v51, %v2398_v15  ;;  %v2397_v25 = vld [vmem:[%s6014_s7 + $0x140] sm:$0xff]  ;;  %v2406_v50 = vld [vmem:[%s6014_s7 + $0x188] sm:$0xff] }
 0x2d1   :  { %v3817_v1 = vpack.c.bf16 %v2169_v32, %v2167_v0  ;;  %v2410_v63 = vld [vmem:[%s6014_s7 + $0x1a8] sm:$0xff]  ;;  %v3843_v45 = vpack.c.bf16 %v2401_v33, %v2397_v25  ;;  %v2405_v32 = vld [vmem:[%s6014_s7 + $0x180] sm:$0xff] }
 0x2d2   :  { %v3845_v0 = vpack.c.bf16 %v2410_v63, %v2406_v50  ;;  %v2441_v18 = vld [vmem:[%s6014_s7 + $0x2a0] sm:$0xff]  ;;  %v2454_v34 = vld [vmem:[%s6014_s7 + $0x308] sm:$0xff]  ;;  %v2360_v50 = vld [vmem:[%s6014_s7 + $0x18] sm:$0xff] }
 0x2d3   :  { %3818 = vmatprep.subr.bf16.mxu1 %v3817_v1  ;;  %v2414_v1 = vld [vmem:[%s6014_s7 + $0x1c8] sm:$0xff]  ;;  %v2449_v29 = vld [vmem:[%s6014_s7 + $0x2e0] sm:$0xff]  ;;  %v2364_v63 = vld [vmem:[%s6014_s7 + $0x38] sm:$0xff] }
 0x2d4   :  { %3820 = vmatpush1.bf16.msra.mxu1 %v3819_v12  ;;  %v2409_v12 = vld [vmem:[%s6014_s7 + $0x1a0] sm:$0xff]  ;;  %v2458_v36 = vld [vmem:[%s6014_s7 + $0x328] sm:$0xff] }
 0x2d5   :  { %v2457_v41 = vld [vmem:[%s6014_s7 + $0x320] sm:$0xff]  ;;  %v2462_v43 = vld [vmem:[%s6014_s7 + $0x348] sm:$0xff] }
 0x2d6   :  { %v2466_v44 = vld [vmem:[%s6014_s7 + $0x368] sm:$0xff]  ;;  %v2465_v31 = vld [vmem:[%s6014_s7 + $0x360] sm:$0xff] }
 0x2d7   :  { %3179 = vmatmul.mubr.msk.f32.vlgmr.msra.gmra.mrb[36].mxu1 %vm47_vm0, %v2170_v6  ;;  %v2418_v6 = vld [vmem:[%s6014_s7 + $0x1e8] sm:$0xff]  ;;  %v2473_v53 = vld [vmem:[%s6014_s7 + $0x3a0] sm:$0xff] }
 0x2d8   :  { %2256 = vmatprep.mubr.f32.mxu1 %v4103_v23  ;;  %v2470_v54 = vld [vmem:[%s6014_s7 + $0x388] sm:$0xff]  ;;  %v2481_v25 = vld [vmem:[%s6014_s7 + $0x3e0] sm:$0xff] }
 0x2d9   :  { %v2474_v55 = vld [vmem:[%s6014_s7 + $0x3a8] sm:$0xff] }
 0x2da   :  { %v2478_v60 = vld [vmem:[%s6014_s7 + $0x3c8] sm:$0xff] }
 0x2db   :  { %3180 = vmatmul.mubr.msk.f32.gmra.mrb[38].mxu1 %vm47_vm0, %v2171_v47  ;;  %v3847_v47 = vpack.c.bf16 %v2409_v12, %v2405_v32  ;;  %v2482_v15 = vld [vmem:[%s6014_s7 + $0x3e8] sm:$0xff]  ;;  %v2363_v32 = vld [vmem:[%s6014_s7 + $0x30] sm:$0xff]  ;;  %v2368_v12 = vld [vmem:[%s6014_s7 + $0x58] sm:$0xff] }
 0x2dc   :  { %2262 = vmatprep.mubr.f32.mxu1 %v4103_v23 }
 0x2df   :  { %3181 = vmatmul.mubr.msk.f32.gmra.mrb[40].mxu1 %vm47_vm0, %v2172_v22  ;;  %v3849_v22 = vpack.c.bf16 %v2418_v6, %v2414_v1  ;;  %v2372_v1 = vld [vmem:[%s6014_s7 + $0x78] sm:$0xff] }
 0x2e0   :  { %2268 = vmatprep.mubr.f32.mxu1 %v4103_v23 }
 0x2e3   :  { %3182 = vmatmul.mubr.msk.f32.gmra.mrb[42].mxu1 %vm47_vm0, %v2173_v5  ;;  %v2413_v5 = vld [vmem:[%s6014_s7 + $0x1c0] sm:$0xff] }
 0x2e4   :  { %2350 = vmatprep.mubr.f32.mxu1 %v4103_v23 }
 0x3aa   :  { %v2252_v35 = vpop.f32.mrb[36].mxu1 }
 0x3ab   :  { %v2254_v7 = vpop.f32.mrb[37].mxu1 }
 0x3ae   :  { %v2258_v24 = vpop.f32.mrb[38].mxu1 }
 0x3af   :  { %v2275_v8 = vmax.f32 %v2252_v35, %v2258_v24  ;;  %v2260_v14 = vpop.f32.mrb[39].mxu1  ;;  %v2417_v35 = vld [vmem:[%s6014_s7 + $0x1e0] sm:$0xff]  ;;  %v2426_v24 = vld [vmem:[%s6014_s7 + $0x228] sm:$0xff] }
 0x3b0   :  { %v2276_v21 = vmax.f32 %v2254_v7, %v2260_v14  ;;  %v2422_v7 = vld [vmem:[%s6014_s7 + $0x208] sm:$0xff] }
 0x3b1   :  { %v3853_v14 = vpack.c.bf16 %v2426_v24, %v2422_v7  ;;  %v2371_v7 = vld [vmem:[%s6014_s7 + $0x70] sm:$0xff]  ;;  %v2376_v24 = vld [vmem:[%s6014_s7 + $0x98] sm:$0xff] }
 0x3b2   :  { %v2264_v56 = vpop.f32.mrb[40].mxu1 }
 0x3b3   :  { %v2266_v4 = vpop.f32.mrb[41].mxu1 }
 0x3b6   :  { %v2270_v10 = vpop.f32.mrb[42].mxu1 }
 0x3b7   :  { %v2277_v58 = vmax.f32 %v2264_v56, %v2270_v10  ;;  %v2272_v11 = vpop.f32.mrb[43].mxu1  ;;  %v2425_v56 = vld [vmem:[%s6014_s7 + $0x220] sm:$0xff]  ;;  %v2434_v10 = vld [vmem:[%s6014_s7 + $0x268] sm:$0xff] }
 0x3b8   :  { %v2278_v23 = vmax.f32 %v2266_v4, %v2272_v11  ;;  %v2430_v4 = vld [vmem:[%s6014_s7 + $0x248] sm:$0xff] }
 0x3b9   :  { %v2279_v39 = vmax.f32 %v2275_v8, %v2277_v58  ;;  %v3851_v8 = vpack.c.bf16 %v2417_v35, %v2413_v5  ;;  %v3857_v11 = vpack.c.bf16 %v2434_v10, %v2430_v4  ;;  %v3889_v5 = vpack.c.bf16 %v2372_v1, %v2368_v12  ;;  %v2367_v35 = vld [vmem:[%s6014_s7 + $0x50] sm:$0xff]  ;;  %v2384_v10 = vld [vmem:[%s6014_s7 + $0xd8] sm:$0xff] }
 0x3ba   :  { %v2280_v19 = vmax.f32 %v2276_v21, %v2278_v23  ;;  %v2421_v21 = vld [vmem:[%s6014_s7 + $0x200] sm:$0xff]  ;;  %v2438_v23 = vld [vmem:[%s6014_s7 + $0x288] sm:$0xff]  ;;  %v2379_v4 = vld [vmem:[%s6014_s7 + $0xb0] sm:$0xff] }
 0x3bb   :  { %v3855_v58 = vpack.c.bf16 %v2425_v56, %v2421_v21  ;;  %v2375_v56 = vld [vmem:[%s6014_s7 + $0x90] sm:$0xff]  ;;  %v2448_v1 = vld [vmem:[%s6014_s7 + $0x2d8] sm:$0xff] }
 0x3bc   :  { %2286 = vmatprep.subr.mxu1 %v2280_v19  ;;  %v2446_v19 = vld [vmem:[%s6014_s7 + $0x2c8] sm:$0xff]  ;;  %v2443_v12 = vld [vmem:[%s6014_s7 + $0x2b0] sm:$0xff] }
 0x3bd   :  { %2287 = vmatpush1.msra.mxu1 %v2279_v39  ;;  %v3861_v39 = vpack.c.bf16 %v2442_v20, %v2438_v23  ;;  %v2387_v23 = vld [vmem:[%s6014_s7 + $0xf0] sm:$0xff]  ;;  %v2392_v20 = vld [vmem:[%s6014_s7 + $0x118] sm:$0xff] }
 0x3be   :  { %3183 = vmatmul.mubr.msk.f32.vlgmr.msra.gmra.mrb[44].mxu1 %vm2282_vm9, %v2281_v27  ;;  %3822 = vmatprep.subr.bf16.mxu1 %v3821_v26  ;;  %v2450_v26 = vld [vmem:[%s6014_s7 + $0x2e8] sm:$0xff]  ;;  %v3863_v27 = vpack.c.bf16 %v2441_v18, %v2437_v17  ;;  %v2391_v18 = vld [vmem:[%s6014_s7 + $0x110] sm:$0xff] }
 0x3bf   :  { %3824 = vmatpush1.bf16.msra.mxu1 %v3823_v3  ;;  %v3865_v3 = vpack.c.bf16 %v2450_v26, %v2446_v19  ;;  %v2395_v19 = vld [vmem:[%s6014_s7 + $0x130] sm:$0xff]  ;;  %v2400_v26 = vld [vmem:[%s6014_s7 + $0x158] sm:$0xff] }
 0x3c0   :  { %3826 = vmatprep.subr.bf16.mxu1 %v3825_v28  ;;  %v2445_v28 = vld [vmem:[%s6014_s7 + $0x2c0] sm:$0xff] }
 0x3c1   :  { %v3867_v37 = vpack.c.bf16 %v2449_v29, %v2445_v28  ;;  %v2399_v29 = vld [vmem:[%s6014_s7 + $0x150] sm:$0xff] }
 0x3c3   :  { %3828 = vmatpush1.bf16.msra.mxu1 %v3827_v38  ;;  %v3869_v38 = vpack.c.bf16 %v2458_v36, %v2454_v34  ;;  %v2403_v34 = vld [vmem:[%s6014_s7 + $0x170] sm:$0xff]  ;;  %v2408_v36 = vld [vmem:[%s6014_s7 + $0x198] sm:$0xff] }
 0x3c4   :  { %3830 = vmatprep.subr.bf16.mxu1 %v3829_v40  ;;  %v2453_v40 = vld [vmem:[%s6014_s7 + $0x300] sm:$0xff] }
 0x3c5   :  { %v3871_v46 = vpack.c.bf16 %v2457_v41, %v2453_v40  ;;  %v2407_v41 = vld [vmem:[%s6014_s7 + $0x190] sm:$0xff] }
 0x3c7   :  { %3832 = vmatpush1.bf16.msra.mxu1 %v3831_v48  ;;  %v3873_v48 = vpack.c.bf16 %v2466_v44, %v2462_v43  ;;  %v2411_v43 = vld [vmem:[%s6014_s7 + $0x1b0] sm:$0xff]  ;;  %v2416_v44 = vld [vmem:[%s6014_s7 + $0x1d8] sm:$0xff] }
 0x3c8   :  { %3834 = vmatprep.subr.bf16.mxu1 %v3833_v52  ;;  %v2461_v52 = vld [vmem:[%s6014_s7 + $0x340] sm:$0xff] }
 0x3c9   :  { %v3875_v57 = vpack.c.bf16 %v2465_v31, %v2461_v52  ;;  %v2415_v31 = vld [vmem:[%s6014_s7 + $0x1d0] sm:$0xff] }
 0x3cb   :  { %3836 = vmatpush1.bf16.msra.mxu1 %v3835_v61  ;;  %v3877_v61 = vpack.c.bf16 %v2474_v55, %v2470_v54  ;;  %v2419_v54 = vld [vmem:[%s6014_s7 + $0x1f0] sm:$0xff]  ;;  %v2424_v55 = vld [vmem:[%s6014_s7 + $0x218] sm:$0xff] }
 0x3cc   :  { %3838 = vmatprep.subr.bf16.mxu1 %v3837_v59  ;;  %v2469_v59 = vld [vmem:[%s6014_s7 + $0x380] sm:$0xff] }
 0x3cd   :  { %v3879_v51 = vpack.c.bf16 %v2473_v53, %v2469_v59  ;;  %v2423_v53 = vld [vmem:[%s6014_s7 + $0x210] sm:$0xff] }
 0x3cf   :  { %3840 = vmatpush1.bf16.msra.mxu1 %v3839_v62  ;;  %v3881_v62 = vpack.c.bf16 %v2482_v15, %v2478_v60  ;;  %v2427_v60 = vld [vmem:[%s6014_s7 + $0x230] sm:$0xff]  ;;  %v2432_v15 = vld [vmem:[%s6014_s7 + $0x258] sm:$0xff] }
 0x3d0   :  { %3842 = vmatprep.subr.bf16.mxu1 %v3841_v30  ;;  %v2477_v30 = vld [vmem:[%s6014_s7 + $0x3c0] sm:$0xff] }
 0x3d1   :  { %v3883_v33 = vpack.c.bf16 %v2481_v25, %v2477_v30  ;;  %v2431_v25 = vld [vmem:[%s6014_s7 + $0x250] sm:$0xff] }
 0x3d3   :  { %3844 = vmatpush1.bf16.msra.mxu1 %v3843_v45  ;;  %v3885_v45 = vpack.c.bf16 %v2364_v63, %v2360_v50  ;;  %v2440_v50 = vld [vmem:[%s6014_s7 + $0x298] sm:$0xff] }
 0x3d4   :  { %3846 = vmatprep.subr.bf16.mxu1 %v3845_v0  ;;  %v2359_v0 = vld [vmem:[%s6014_s7 + $0x10] sm:$0xff]  ;;  %v2444_v63 = vld [vmem:[%s6014_s7 + $0x2b8] sm:$0xff] }
 0x3d7   :  { %3848 = vmatpush1.bf16.msra.mxu1 %v3847_v47  ;;  %v3887_v47 = vpack.c.bf16 %v2363_v32, %v2359_v0  ;;  %v3925_v0 = vpack.c.bf16 %v2444_v63, %v2440_v50  ;;  %v2439_v32 = vld [vmem:[%s6014_s7 + $0x290] sm:$0xff]  ;;  %v2686_v50 = vld [vmem:[%s6016_s9 + $0xc8] sm:$0xff] }
 0x3d8   :  { %3850 = vmatprep.subr.bf16.mxu1 %v3849_v22 }
 0x3db   :  { %3852 = vmatpush1.bf16.msra.mxu1 %v3851_v8  ;;  %v2380_v8 = vld [vmem:[%s6014_s7 + $0xb8] sm:$0xff] }
 0x3dc   :  { %3854 = vmatprep.subr.bf16.mxu1 %v3853_v14  ;;  %v3891_v14 = vpack.c.bf16 %v2371_v7, %v2367_v35  ;;  %v3893_v21 = vpack.c.bf16 %v2380_v8, %v2376_v24  ;;  %v2447_v35 = vld [vmem:[%s6014_s7 + $0x2d0] sm:$0xff]  ;;  %v2456_v24 = vld [vmem:[%s6014_s7 + $0x318] sm:$0xff] }
 0x3dd   :  { %v2451_v7 = vld [vmem:[%s6014_s7 + $0x2f0] sm:$0xff]  ;;  %v2460_v8 = vld [vmem:[%s6014_s7 + $0x338] sm:$0xff] }
 0x3df   :  { %3856 = vmatpush1.bf16.msra.mxu1 %v3855_v58  ;;  %v2388_v58 = vld [vmem:[%s6014_s7 + $0xf8] sm:$0xff] }
 0x3e0   :  { %3858 = vmatprep.subr.bf16.mxu1 %v3857_v11  ;;  %v3895_v11 = vpack.c.bf16 %v2379_v4, %v2375_v56  ;;  %v3897_v13 = vpack.c.bf16 %v2388_v58, %v2384_v10  ;;  %v2455_v56 = vld [vmem:[%s6014_s7 + $0x310] sm:$0xff]  ;;  %v2464_v10 = vld [vmem:[%s6014_s7 + $0x358] sm:$0xff] }
 0x3e1   :  { %v2459_v4 = vld [vmem:[%s6014_s7 + $0x330] sm:$0xff]  ;;  %v2468_v58 = vld [vmem:[%s6014_s7 + $0x378] sm:$0xff] }
 0x3e3   :  { %3860 = vmatpush1.bf16.msra.mxu1 %v3859_v2  ;;  %v2396_v2 = vld [vmem:[%s6014_s7 + $0x138] sm:$0xff] }
 0x3e4   :  { %3862 = vmatprep.subr.bf16.mxu1 %v3861_v39  ;;  %v3899_v39 = vpack.c.bf16 %v2387_v23, %v2383_v16  ;;  %v3901_v17 = vpack.c.bf16 %v2396_v2, %v2392_v20  ;;  %v2463_v16 = vld [vmem:[%s6014_s7 + $0x350] sm:$0xff]  ;;  %v2472_v20 = vld [vmem:[%s6014_s7 + $0x398] sm:$0xff] }
 0x3e5   :  { %v2467_v23 = vld [vmem:[%s6014_s7 + $0x370] sm:$0xff]  ;;  %v2476_v2 = vld [vmem:[%s6014_s7 + $0x3b8] sm:$0xff] }
 0x3e7   :  { %3864 = vmatpush1.bf16.msra.mxu1 %v3863_v27  ;;  %v2404_v27 = vld [vmem:[%s6014_s7 + $0x178] sm:$0xff] }
 0x3e8   :  { %3866 = vmatprep.subr.bf16.mxu1 %v3865_v3  ;;  %v3903_v3 = vpack.c.bf16 %v2395_v19, %v2391_v18  ;;  %v3905_v28 = vpack.c.bf16 %v2404_v27, %v2400_v26  ;;  %v2471_v18 = vld [vmem:[%s6014_s7 + $0x390] sm:$0xff]  ;;  %v2480_v26 = vld [vmem:[%s6014_s7 + $0x3d8] sm:$0xff] }
 0x3e9   :  { %v2475_v19 = vld [vmem:[%s6014_s7 + $0x3b0] sm:$0xff]  ;;  %v2484_v27 = vld [vmem:[%s6014_s7 + $0x3f8] sm:$0xff] }
 0x3eb   :  { %3868 = vmatpush1.bf16.msra.mxu1 %v3867_v37  ;;  %v2412_v37 = vld [vmem:[%s6014_s7 + $0x1b8] sm:$0xff] }
 0x3ec   :  { %3870 = vmatprep.subr.bf16.mxu1 %v3869_v38  ;;  %v3907_v38 = vpack.c.bf16 %v2403_v34, %v2399_v29  ;;  %v3909_v40 = vpack.c.bf16 %v2412_v37, %v2408_v36  ;;  %v2479_v29 = vld [vmem:[%s6014_s7 + $0x3d0] sm:$0xff]  ;;  %v2677_v36 = vld [vmem:[%s6016_s9 + $0x80] sm:$0xff]  ;;  %v2678_v37 = vld [vmem:[%s6016_s9 + $0x88] sm:$0xff] }
 0x3ed   :  { %v2483_v34 = vld [vmem:[%s6014_s7 + $0x3f0] sm:$0xff] }
 0x3ef   :  { %3872 = vmatpush1.bf16.msra.mxu1 %v3871_v46  ;;  %v2420_v46 = vld [vmem:[%s6014_s7 + $0x1f8] sm:$0xff] }
 0x3f0   :  { %3874 = vmatprep.subr.bf16.mxu1 %v3873_v48  ;;  %v3911_v48 = vpack.c.bf16 %v2411_v43, %v2407_v41  ;;  %v3913_v52 = vpack.c.bf16 %v2420_v46, %v2416_v44  ;;  %v2661_v41 = vld [vmem:[%s6016_s9] sm:$0xff]  ;;  %v2662_v43 = vld [vmem:[%s6016_s9 + $0x8] sm:$0xff]  ;;  %v2679_v44 = vld [vmem:[%s6016_s9 + $0x90] sm:$0xff] }
 0x3f1   :  { %v2680_v46 = vld [vmem:[%s6016_s9 + $0x98] sm:$0xff] }
 0x3f3   :  { %3876 = vmatpush1.bf16.msra.mxu1 %v3875_v57  ;;  %v2428_v57 = vld [vmem:[%s6014_s7 + $0x238] sm:$0xff] }
 0x3f4   :  { %3878 = vmatprep.subr.bf16.mxu1 %v3877_v61  ;;  %v3915_v61 = vpack.c.bf16 %v2419_v54, %v2415_v31  ;;  %v3917_v59 = vpack.c.bf16 %v2428_v57, %v2424_v55  ;;  %v2663_v31 = vld [vmem:[%s6016_s9 + $0x10] sm:$0xff]  ;;  %v2664_v54 = vld [vmem:[%s6016_s9 + $0x18] sm:$0xff]  ;;  %v2681_v55 = vld [vmem:[%s6016_s9 + $0xa0] sm:$0xff] }
 0x3f5   :  { %v2682_v57 = vld [vmem:[%s6016_s9 + $0xa8] sm:$0xff] }
 0x3f7   :  { %3880 = vmatpush1.bf16.msra.mxu1 %v3879_v51  ;;  %v2436_v51 = vld [vmem:[%s6014_s7 + $0x278] sm:$0xff] }
 0x3f8   :  { %3882 = vmatprep.subr.bf16.mxu1 %v3881_v62  ;;  %v3919_v62 = vpack.c.bf16 %v2427_v60, %v2423_v53  ;;  %v3921_v30 = vpack.c.bf16 %v2436_v51, %v2432_v15  ;;  %v2665_v53 = vld [vmem:[%s6016_s9 + $0x20] sm:$0xff]  ;;  %v2666_v60 = vld [vmem:[%s6016_s9 + $0x28] sm:$0xff]  ;;  %v2683_v15 = vld [vmem:[%s6016_s9 + $0xb0] sm:$0xff] }
 0x3f9   :  { %v3959_v51 = vpack.c.bf16 %v2666_v60, %v2665_v53 }
 0x3fb   :  { %3884 = vmatpush1.bf16.msra.mxu1 %v3883_v33  ;;  %v2435_v33 = vld [vmem:[%s6014_s7 + $0x270] sm:$0xff] }
 0x3fc   :  { %3886 = vmatprep.subr.bf16.mxu1 %v3885_v45  ;;  %v3923_v45 = vpack.c.bf16 %v2435_v33, %v2431_v25  ;;  %v2668_v25 = vld [vmem:[%s6016_s9 + $0x38] sm:$0xff]  ;;  %v2685_v33 = vld [vmem:[%s6016_s9 + $0xc0] sm:$0xff] }
 0x491   :  { %v5609_v6 = vpop.f32.mrb[44].mxu1 }
 0x492   :  { %v2354_v22 = vpop.f32.mrb[45].mxu1 }
 0x493   :  { %2571 = vmatprep.mubr.f32.mxu1 %v2354_v22 }
 0x494   :  { %2572 = vmatmul.mubr.f32.vlgmr.msra.gmra.mrb[46].mxu1 %v5609_v6 }
 0x495   :  { %3888 = vmatpush1.bf16.msra.mxu1 %v3887_v47  ;;  %2642 = vmatprep.mubr.f32.mxu1 %v2354_v22  ;;  %v2452_v47 = vld [vmem:[%s6014_s7 + $0x2f8] sm:$0xff]  ;;  %v3927_v22 = vpack.c.bf16 %v2443_v12, %v2439_v32  ;;  %v2670_v32 = vld [vmem:[%s6016_s9 + $0x48] sm:$0xff]  ;;  %v2687_v12 = vld [vmem:[%s6016_s9 + $0xd0] sm:$0xff] }
 0x496   :  { %3890 = vmatprep.subr.bf16.mxu1 %v3889_v5  ;;  %v3929_v5 = vpack.c.bf16 %v2452_v47, %v2448_v1  ;;  %v2688_v1 = vld [vmem:[%s6016_s9 + $0xd8] sm:$0xff] }
 0x499   :  { %3892 = vmatpush1.bf16.msra.mxu1 %v3891_v14  ;;  %v3931_v14 = vpack.c.bf16 %v2451_v7, %v2447_v35  ;;  %v2672_v35 = vld [vmem:[%s6016_s9 + $0x58] sm:$0xff] }
 0x49a   :  { %3894 = vmatprep.subr.bf16.mxu1 %v3893_v21  ;;  %v3933_v21 = vpack.c.bf16 %v2460_v8, %v2456_v24  ;;  %v2689_v24 = vld [vmem:[%s6016_s9 + $0xe0] sm:$0xff]  ;;  %v2690_v8 = vld [vmem:[%s6016_s9 + $0xe8] sm:$0xff] }
 0x49d   :  { %3896 = vmatpush1.bf16.msra.mxu1 %v3895_v11  ;;  %v3935_v11 = vpack.c.bf16 %v2459_v4, %v2455_v56  ;;  %v2674_v56 = vld [vmem:[%s6016_s9 + $0x68] sm:$0xff] }
 0x49e   :  { %3898 = vmatprep.subr.bf16.mxu1 %v3897_v13  ;;  %v3937_v13 = vpack.c.bf16 %v2468_v58, %v2464_v10  ;;  %v2691_v10 = vld [vmem:[%s6016_s9 + $0xf0] sm:$0xff]  ;;  %v2692_v58 = vld [vmem:[%s6016_s9 + $0xf8] sm:$0xff] }
 0x4a1   :  { %3900 = vmatpush1.bf16.msra.mxu1 %v3899_v39  ;;  %v3939_v39 = vpack.c.bf16 %v2467_v23, %v2463_v16  ;;  %v2676_v16 = vld [vmem:[%s6016_s9 + $0x78] sm:$0xff] }
 0x4a2   :  { %3902 = vmatprep.subr.bf16.mxu1 %v3901_v17  ;;  %v3941_v17 = vpack.c.bf16 %v2476_v2, %v2472_v20  ;;  %v2709_v20 = vld [vmem:[%s6016_s9 + $0x180] sm:$0xff]  ;;  %v2710_v2 = vld [vmem:[%s6016_s9 + $0x188] sm:$0xff] }
 0x4a5   :  { %3904 = vmatpush1.bf16.msra.mxu1 %v3903_v3  ;;  %v3943_v3 = vpack.c.bf16 %v2475_v19, %v2471_v18 }
 0x4a6   :  { %3906 = vmatprep.subr.bf16.mxu1 %v3905_v28  ;;  %v3945_v28 = vpack.c.bf16 %v2484_v27, %v2480_v26 }
 0x4a9   :  { %3908 = vmatpush1.bf16.msra.mxu1 %v3907_v38  ;;  %v3947_v38 = vpack.c.bf16 %v2483_v34, %v2479_v29  ;;  %v2693_v29 = vld [vmem:[%s6016_s9 + $0x100] sm:$0xff]  ;;  %v2694_v34 = vld [vmem:[%s6016_s9 + $0x108] sm:$0xff] }
 0x4aa   :  { %3910 = vmatprep.subr.bf16.mxu1 %v3909_v40  ;;  %v3949_v40 = vpack.c.bf16 %v2678_v37, %v2677_v36 }
 0x4ad   :  { %3912 = vmatpush1.bf16.msra.mxu1 %v3911_v48  ;;  %v3951_v48 = vpack.c.bf16 %v2662_v43, %v2661_v41  ;;  %v2695_v43 = vld [vmem:[%s6016_s9 + $0x110] sm:$0xff] }
 0x4ae   :  { %3914 = vmatprep.subr.bf16.mxu1 %v3913_v52  ;;  %v3953_v52 = vpack.c.bf16 %v2680_v46, %v2679_v44  ;;  %v2696_v44 = vld [vmem:[%s6016_s9 + $0x118] sm:$0xff] }
 0x4b1   :  { %3916 = vmatpush1.bf16.msra.mxu1 %v3915_v61  ;;  %v3955_v61 = vpack.c.bf16 %v2664_v54, %v2663_v31  ;;  %v3987_v31 = vpack.c.bf16 %v2696_v44, %v2695_v43 }
 0x4b2   :  { %3918 = vmatprep.subr.bf16.mxu1 %v3917_v59  ;;  %v3957_v59 = vpack.c.bf16 %v2682_v57, %v2681_v55  ;;  %v2697_v55 = vld [vmem:[%s6016_s9 + $0x120] sm:$0xff]  ;;  %v2698_v57 = vld [vmem:[%s6016_s9 + $0x128] sm:$0xff] }
 0x4b3   :  { %v3991_v53 = vpack.c.bf16 %v2698_v57, %v2697_v55 }
 0x4b5   :  { %3920 = vmatpush1.bf16.msra.mxu1 %v3919_v62 }
 0x4b6   :  { %3922 = vmatprep.subr.bf16.mxu1 %v3921_v30  ;;  %v2667_v30 = vld [vmem:[%s6016_s9 + $0x30] sm:$0xff] }
 0x4b7   :  { %v3963_v63 = vpack.c.bf16 %v2668_v25, %v2667_v30 }
 0x4b9   :  { %3924 = vmatpush1.bf16.msra.mxu1 %v3923_v45  ;;  %v3965_v45 = vpack.c.bf16 %v2686_v50, %v2685_v33  ;;  %v2701_v33 = vld [vmem:[%s6016_s9 + $0x140] sm:$0xff]  ;;  %v2702_v50 = vld [vmem:[%s6016_s9 + $0x148] sm:$0xff] }
 0x4ba   :  { %3926 = vmatprep.subr.bf16.mxu1 %v3925_v0  ;;  %v2669_v0 = vld [vmem:[%s6016_s9 + $0x40] sm:$0xff] }
 0x4bb   :  { %v3967_v47 = vpack.c.bf16 %v2670_v32, %v2669_v0  ;;  %v3999_v0 = vpack.c.bf16 %v2702_v50, %v2701_v33 }
 0x4bd   :  { %3928 = vmatpush1.bf16.msra.mxu1 %v3927_v22  ;;  %v3969_v22 = vpack.c.bf16 %v2688_v1, %v2687_v12  ;;  %v2703_v12 = vld [vmem:[%s6016_s9 + $0x150] sm:$0xff]  ;;  %v2704_v1 = vld [vmem:[%s6016_s9 + $0x158] sm:$0xff] }
 0x4be   :  { %3930 = vmatprep.subr.bf16.mxu1 %v3929_v5  ;;  %v2671_v5 = vld [vmem:[%s6016_s9 + $0x50] sm:$0xff] }
 0x4bf   :  { %v3971_v7 = vpack.c.bf16 %v2672_v35, %v2671_v5  ;;  %v4003_v5 = vpack.c.bf16 %v2704_v1, %v2703_v12 }
 0x4c1   :  { %3932 = vmatpush1.bf16.msra.mxu1 %v3931_v14  ;;  %v3973_v14 = vpack.c.bf16 %v2690_v8, %v2689_v24  ;;  %v2706_v24 = vld [vmem:[%s6016_s9 + $0x168] sm:$0xff]  ;;  %v2723_v8 = vld [vmem:[%s6016_s9 + $0x1f0] sm:$0xff] }
 0x4c2   :  { %3934 = vmatprep.subr.bf16.mxu1 %v3933_v21  ;;  %v2673_v21 = vld [vmem:[%s6016_s9 + $0x60] sm:$0xff] }
 0x4c3   :  { %v3975_v4 = vpack.c.bf16 %v2674_v56, %v2673_v21 }
 0x4c5   :  { %3936 = vmatpush1.bf16.msra.mxu1 %v3935_v11  ;;  %v3977_v11 = vpack.c.bf16 %v2692_v58, %v2691_v10  ;;  %v2708_v10 = vld [vmem:[%s6016_s9 + $0x178] sm:$0xff] }
 0x4c6   :  { %3938 = vmatprep.subr.bf16.mxu1 %v3937_v13  ;;  %v2675_v13 = vld [vmem:[%s6016_s9 + $0x70] sm:$0xff] }
 0x4c7   :  { %v3979_v23 = vpack.c.bf16 %v2676_v16, %v2675_v13  ;;  %v2501_v13 = vsub.s32 3, %v5358_v9 }
 0x4c9   :  { %3940 = vmatpush1.bf16.msra.mxu1 %v3939_v39  ;;  %v3981_v39 = vpack.c.bf16 %v2710_v2, %v2709_v20 }
 0x4ca   :  { %3942 = vmatprep.subr.bf16.mxu1 %v3941_v17  ;;  %v5892_v17 = vld [vmem:[%s6015_s8] sm:$0xf] }
 0x4cb   :  { %v2490_v18 = vrot.slane %v5892_v17, %v5361_v42  ;;  %v2494_v19 = vrot.slane %v5892_v17, %v5367_v49  ;;  %v2711_v42 = vld [vmem:[%s6016_s9 + $0x190] sm:$0xff]  ;;  %v2712_v49 = vld [vmem:[%s6016_s9 + $0x198] sm:$0xff] }
 0x4cc   :  { %v3985_v41 = vpack.c.bf16 %v2712_v49, %v2711_v42 }
 0x4cd   :  { %3944 = vmatpush1.bf16.msra.mxu1 %v3943_v3 }
 0x4ce   :  { %3946 = vmatprep.subr.bf16.mxu1 %v3945_v28 }
 0x4d1   :  { %3948 = vmatpush1.bf16.msra.mxu1 %v3947_v38  ;;  %v3983_v38 = vpack.c.bf16 %v2694_v34, %v2693_v29 }
 0x4d2   :  { %3950 = vmatprep.subr.bf16.mxu1 %v3949_v40 }
 0x4d4   :  { %2643 = vmatmul.mubr.f32.vlgmr.msra.gmra.mrb[48].mxu1 %v5609_v6  ;;  %v2684_v6 = vld [vmem:[%s6016_s9 + $0xb8] sm:$0xff] }
 0x4d5   :  { %3952 = vmatpush3.bf16.msra.mxu1 %v3951_v48  ;;  %v3961_v62 = vpack.c.bf16 %v2684_v6, %v2683_v15  ;;  %v2713_v48 = vld [vmem:[%s6016_s9 + $0x1a0] sm:$0xff]  ;;  %v2699_v15 = vld [vmem:[%s6016_s9 + $0x130] sm:$0xff]  ;;  %v2700_v6 = vld [vmem:[%s6016_s9 + $0x138] sm:$0xff] }
 0x4d6   :  { %3954 = vmatprep.subr.bf16.mxu1 %v3953_v52  ;;  %v2714_v52 = vld [vmem:[%s6016_s9 + $0x1a8] sm:$0xff]  ;;  %v3995_v30 = vpack.c.bf16 %v2700_v6, %v2699_v15 }
 0x4d7   :  { %v3989_v54 = vpack.c.bf16 %v2714_v52, %v2713_v48 }
 0x4d9   :  { %3956 = vmatpush3.bf16.msra.mxu1 %v3955_v61  ;;  %v2715_v61 = vld [vmem:[%s6016_s9 + $0x1b0] sm:$0xff] }
 0x4da   :  { %3958 = vmatprep.subr.bf16.mxu1 %v3957_v59  ;;  %v2716_v59 = vld [vmem:[%s6016_s9 + $0x1b8] sm:$0xff] }
 0x4db   :  { %v3993_v60 = vpack.c.bf16 %v2716_v59, %v2715_v61 }
 0x4dd   :  { %3960 = vmatpush3.bf16.msra.mxu1 %v3959_v51  ;;  %v2717_v51 = vld [vmem:[%s6016_s9 + $0x1c0] sm:$0xff] }
 0x4de   :  { %3962 = vmatprep.subr.bf16.mxu1 %v3961_v62  ;;  %v2718_v62 = vld [vmem:[%s6016_s9 + $0x1c8] sm:$0xff] }
 0x4df   :  { %v3997_v25 = vpack.c.bf16 %v2718_v62, %v2717_v51 }
 0x4e1   :  { %3964 = vmatpush3.bf16.msra.mxu1 %v3963_v63  ;;  %v2719_v63 = vld [vmem:[%s6016_s9 + $0x1d0] sm:$0xff] }
 0x4e2   :  { %3966 = vmatprep.subr.bf16.mxu1 %v3965_v45  ;;  %v2720_v45 = vld [vmem:[%s6016_s9 + $0x1d8] sm:$0xff] }
 0x4e3   :  { %v4001_v32 = vpack.c.bf16 %v2720_v45, %v2719_v63 }
 0x4e5   :  { %3968 = vmatpush3.bf16.msra.mxu1 %v3967_v47  ;;  %v2721_v47 = vld [vmem:[%s6016_s9 + $0x1e0] sm:$0xff] }
 0x4e6   :  { %3970 = vmatprep.subr.bf16.mxu1 %v3969_v22  ;;  %v2722_v22 = vld [vmem:[%s6016_s9 + $0x1e8] sm:$0xff] }
 0x4e7   :  { %v4005_v35 = vpack.c.bf16 %v2722_v22, %v2721_v47 }
 0x4e9   :  { %3972 = vmatpush3.bf16.msra.mxu1 %v3971_v7  ;;  %v2705_v7 = vld [vmem:[%s6016_s9 + $0x160] sm:$0xff] }
 0x4ea   :  { %3974 = vmatprep.subr.bf16.mxu1 %v3973_v14  ;;  %v2724_v14 = vld [vmem:[%s6016_s9 + $0x1f8] sm:$0xff]  ;;  %v4007_v21 = vpack.c.bf16 %v2706_v24, %v2705_v7 }
 0x4eb   :  { %v4009_v56 = vpack.c.bf16 %v2724_v14, %v2723_v8 }
 0x4ed   :  { %3976 = vmatpush3.bf16.msra.mxu1 %v3975_v4  ;;  %v2707_v4 = vld [vmem:[%s6016_s9 + $0x170] sm:$0xff] }
 0x4ee   :  { %3978 = vmatprep.subr.bf16.mxu1 %v3977_v11  ;;  %v4011_v58 = vpack.c.bf16 %v2708_v10, %v2707_v4  ;;  %v2497_v11 = vsub.s32 2, %v5358_v9  ;;  %v3184_v9 = vld [vmem:[%s6017_s10] ss:$0 sm:$0xff] }
 0x4f0   :  { %v2498_v16 = vrot.slane %v5892_v17, %v2497_v11 }
 0x4f1   :  { %3980 = vmatpush3.bf16.msra.mxu1 %v3979_v23  ;;  %v2502_v23 = vrot.slane %v5892_v17, %v2501_v13 }
 0x4f2   :  { %3982 = vmatprep.subr.bf16.mxu1 %v3981_v39 }
 0x567   :  { %v2573_v26 = vpop.f32.mrb[46].mxu1 }
 0x568   :  { %v2574_v27 = vadd.f32 %v2573_v26, %v2490_v18  ;;  %v2575_v3 = vpop.f32.mrb[47].mxu1 }
 0x569   :  { %v2576_v28 = vadd.f32 %v2575_v3, %v2494_v19 }
 0x56a   :  { %v2653_v36 = vmul.f32 0.1, %v2574_v27  ;;  %vm2649_vm10 = vcmp.gt.f32.partialorder %v2574_v27, 0.0 }
 0x56b   :  { %v2654_v37 = vmul.f32 0.1, %v2576_v28  ;;  %vm2650_vm11 = vcmp.gt.f32.partialorder %v2576_v28, 0.0 }
 0x56c   :  { %v2657_v46 = vsel %vm2649_vm10, %v2574_v27, %v2653_v36 }
 0x56d   :  { %v2658_v40 = vsel %vm2650_vm11, %v2576_v28, %v2654_v37 }
 0x56e   :  { %2796 = vmatprep.mubr.f32.mxu1 %v2658_v40 }
 0x56f   :  { %2797 = vmatmul.mubr.f32.vlgmr.msra.gmra.mrb[50].mxu1 %v2657_v46 }
 0x570   :  { %3984 = vmatpush3.bf16.msra.mxu1 %v3983_v38 }
 0x571   :  { %3986 = vmatprep.subr.bf16.mxu1 %v3985_v41 }
 0x574   :  { %3988 = vmatpush3.bf16.msra.mxu1 %v3987_v31 }
 0x575   :  { %3990 = vmatprep.subr.bf16.mxu1 %v3989_v54 }
 0x578   :  { %3992 = vmatpush3.bf16.msra.mxu1 %v3991_v53 }
 0x579   :  { %3994 = vmatprep.subr.bf16.mxu1 %v3993_v60 }
 0x57c   :  { %3996 = vmatpush3.bf16.msra.mxu1 %v3995_v30 }
 0x57d   :  { %3998 = vmatprep.subr.bf16.mxu1 %v3997_v25 }
 0x580   :  { %4000 = vmatpush3.bf16.msra.mxu1 %v3999_v0 }
 0x581   :  { %4002 = vmatprep.subr.bf16.mxu1 %v4001_v32 }
 0x584   :  { %4004 = vmatpush3.bf16.msra.mxu1 %v4003_v5 }
 0x585   :  { %4006 = vmatprep.subr.bf16.mxu1 %v4005_v35 }
 0x588   :  { %4008 = vmatpush3.bf16.msra.mxu1 %v4007_v21 }
 0x589   :  { %4010 = vmatprep.subr.bf16.mxu1 %v4009_v56 }
 0x58c   :  { %4012 = vmatpush3.bf16.msra.mxu1 %v4011_v58 }
 0x5a7   :  { %v2644_v20 = vpop.f32.mrb[48].mxu1 }
 0x5a8   :  { %v2645_v2 = vadd.f32 %v2644_v20, %v2498_v16  ;;  %v2646_v39 = vpop.f32.mrb[49].mxu1 }
 0x5a9   :  { %v2647_v18 = vadd.f32 %v2646_v39, %v2502_v23 }
 0x5aa   :  { %v2655_v19 = vmul.f32 0.1, %v2645_v2  ;;  %vm2651_vm12 = vcmp.gt.f32.partialorder %v2645_v2, 0.0 }
 0x5ab   :  { %v2656_v26 = vmul.f32 0.1, %v2647_v18  ;;  %vm2652_vm13 = vcmp.gt.f32.partialorder %v2647_v18, 0.0 }
 0x5ac   :  { %v2659_v3 = vsel %vm2651_vm12, %v2645_v2, %v2655_v19 }
 0x5ad   :  { %v2660_v27 = vsel %vm2652_vm13, %v2647_v18, %v2656_v26 }
 0x5ae   :  { %2866 = vmatprep.mubr.f32.mxu1 %v2660_v27 }
 0x5af   :  { %2867 = vmatmul.mubr.f32.vlgmr.msra.gmra.mrb[52].mxu1 %v2659_v3 }
 0x642   :  { %v3289_v28 = vpop.f32.mrb[50].mxu1 }
 0x643   :  { %v3290_v29 = vpop.f32.mrb[51].mxu1 }
 0x644   :  { %v3291_v34 = vadd.f32 %v3290_v29, %v3289_v28 }
 0x646   :  { %v2799_v42 = vadd.f32 %v3291_v34, %v3184_v9 }
 0x682   :  { %v3324_v17 = vpop.f32.mrb[52].mxu1 }
 0x683   :  { %v3325_v36 = vpop.f32.mrb[53].mxu1 }
 0x684   :  { %v3326_v49 = vadd.f32 %v3325_v36, %v3324_v17 }
 0x686   :  { %v2869_v37 = vadd.f32 %v3326_v49, %v2799_v42 }
 0x688   :  { %2872 = vst [vmem:[#allocation2] sm:$0x3] %v2869_v37 }
 0x689   :  { %4090 = shalt.err (!%p4087_p4)
}
 0x68a   :  { %s4091_s10 = scalar_lea.hbm %s6018_s11, 32 }
 0x68b   :  { %p4092_p5 = scmp.ne.s32.totalorder %s6018_s11, %s4091_s10  ;;  %p4095_p6 = scmp.lt.u32.totalorder %s4091_s10, %s6018_s11 }
 0x68d   :  { %p4097_p7 = pnand %p4095_p6, %p4092_p5 }
 0x68f   :  { %4100 = shalt.err (!%p4097_p7)
}
 0x690   :  { %2882 = dma.vmem_to_hbm [thread:$0]  %s2880_s4, 32, %s6018_s11, [#allocation3]  }
 0x691   :  { %4101 = dma.done.wait [#allocation3], 32  }
 0x692   :  { %4102 = vsyncadd [#allocation3], 4294967264 }
 0x693   :  { %2886 = vsyncpa [#allocation3], 1 }

</bundles_post_ra>
